<compile_context>
chip_gen: v5e
topology: v5e:2x2
jax: 0.10.0
libtpu: 0.0.40
codegen_flags: <defaults>
</compile_context>

<pallas_src>
import functools

import jax
import jax.numpy as jnp
from jax import lax
from jax.experimental import pallas as pl
from jax.experimental.pallas import tpu as pltpu

LANES = 128  # lane width of every packed weight block and wide intermediate


# ------------------------------ fused Pallas kernel ------------------------------
def _fused_kernel(tok_ref, f_ref, b_ref, out_ref, *,
                  T, BP, V, H1, H2,
                  off_emb, off_wih1, off_b1, off_b2,
                  off_w1, off_c1, off_w2, off_c2, off_w3, off_c3,
                  off_whh1, off_w2s):
    # tok_ref : (T*BP, 1) int32  time-major, batch padded to BP (multiple of 8)
    # f_ref   : (rows, 128) f32  packed blob (emb, wih1, biases, MLP head)
    # b_ref   : (rows, 128) bf16 packed blob (whh1, [wih2; whh2] stacked)
    # out_ref : (BP, 128)  f32   real output in cols [0, O)
    TB = T * BP

    # ---- embedding lookup fused as a one-hot matmul (off the recurrent path) ----
    tok = tok_ref[...]                                                   # (TB, 1)
    iota = lax.broadcasted_iota(jnp.int32, (TB, V), 1)                   # (TB, V)
    onehot = jnp.where(tok == iota, 1.0, 0.0).astype(jnp.float32)        # (TB, V)
    emb = f_ref[pl.ds(off_emb, V), :]                                    # (V, 128)
    x = jnp.dot(onehot, emb, preferred_element_type=jnp.float32)         # (TB, 128)

    # ---- layer-1 input projection hoisted out of the recurrence (f32) ----
    wih1 = f_ref[pl.ds(off_wih1, LANES), :]                              # (128, 128)
    gx1 = jnp.dot(x, wih1, preferred_element_type=jnp.float32)           # (TB, 128)
    b1 = f_ref[pl.ds(off_b1, BP), :]                                     # (BP, 128)
    b2 = f_ref[pl.ds(off_b2, BP), :]                                     # (BP, 128)

    # recurrent weights in bf16 (single load, reused by every unrolled step)
    whh1 = b_ref[pl.ds(off_whh1, H1), :]                                 # (H1, 128) bf16
    w2s = b_ref[pl.ds(off_w2s, H1 + H2), :]                              # (H1+H2, 128) bf16

    h1 = jnp.zeros((BP, H1), jnp.float32)
    c1 = jnp.zeros((BP, H1), jnp.float32)
    h2 = jnp.zeros((BP, H2), jnp.float32)
    c2 = jnp.zeros((BP, H2), jnp.float32)
    h2_steps = []
    for t in range(T):  # fully unrolled; both layers interleaved
        # --- LSTM layer 1, step t: bf16 recurrent matmul, f32 accumulation ---
        g1 = gx1[t * BP:(t + 1) * BP, :] + b1 + jnp.dot(
            h1.astype(jnp.bfloat16), whh1, preferred_element_type=jnp.float32)
        sg = jax.nn.sigmoid(g1)        # full-width EUP pass
        tg = jnp.tanh(g1)              # full-width EUP pass
        c1 = sg[:, H1:2 * H1] * c1 + sg[:, 0:H1] * tg[:, 2 * H1:3 * H1]
        h1 = sg[:, 3 * H1:4 * H1] * jnp.tanh(c1)
        # dropout1: identity (inference)

        # --- LSTM layer 2, step t: ONE fused matmul over concat([h1_t, h2_prev]) ---
        xin = jnp.concatenate([h1, h2], axis=1).astype(jnp.bfloat16)     # (BP, H1+H2)
        g2 = b2 + jnp.dot(xin, w2s, preferred_element_type=jnp.float32)  # (BP, 128)
        sg2 = jax.nn.sigmoid(g2)
        tg2 = jnp.tanh(g2)
        c2 = sg2[:, H2:2 * H2] * c2 + sg2[:, 0:H2] * tg2[:, 2 * H2:3 * H2]
        h2 = sg2[:, 3 * H2:4 * H2] * jnp.tanh(c2)
        h2_steps.append(h2)
        # dropout2: identity (inference)

    # ---- flatten(start_dim=1) + linear1 fused:
    #      flat @ W1 = sum_t h2_t @ W1[t*H2:(t+1)*H2]  (tile-aligned, lane-dense views)
    pre1 = f_ref[pl.ds(off_c1, BP), :]                                   # (BP, 128)
    for t in range(T):
        pre1 = pre1 + jnp.dot(h2_steps[t],
                              f_ref[pl.ds(off_w1 + t * H2, H2), :],
                              preferred_element_type=jnp.float32)
    z = jnp.maximum(pre1, 0.0)                                           # relu1 (dropout3 = id)
    z = jnp.maximum(jnp.dot(z, f_ref[pl.ds(off_w2, LANES), :],
                            preferred_element_type=jnp.float32)
                    + f_ref[pl.ds(off_c2, BP), :], 0.0)                  # relu2 (dropout4 = id)
    out_ref[...] = (jnp.dot(z, f_ref[pl.ds(off_w3, LANES), :],
                            preferred_element_type=jnp.float32)
                    + f_ref[pl.ds(off_c3, BP), :])


def build_forward(layout, *, T, BP, V, H1, H2, O):
    kern = functools.partial(_fused_kernel, T=T, BP=BP, V=V, H1=H1, H2=H2, **layout)
    vmem = pl.BlockSpec(memory_space=pltpu.MemorySpace.VMEM)

    @jax.jit
    def fwd(tokens, fblob, bblob):
        B = tokens.shape[0]
        # glue only: time-major reorder + pad batch to the sublane multiple BP
        tok_t = jnp.transpose(tokens).astype(jnp.int32)                  # (T, B)
        tok_t = jnp.pad(tok_t, ((0, 0), (0, BP - B)))                    # (T, BP)
        tok_tm = tok_t.reshape(T * BP, 1)
        out = pl.pallas_call(
            kern,
            out_shape=jax.ShapeDtypeStruct((BP, LANES), jnp.float32),
            in_specs=[vmem, vmem, vmem],
            out_specs=vmem,
        )(tok_tm, fblob, bblob)
        return out[:B, :O]
    return fwd


# ------------------------------ parameters ------------------------------
def init_params(key, cfg):
    V, E = cfg["vocab_size"], cfg["embedding_dim"]
    H1, H2 = cfg["lstm_hidden_dim1"], cfg["lstm_hidden_dim2"]
    T = cfg["seq_len"]
    L1, L2, O = cfg["linear_hidden_dim1"], cfg["linear_hidden_dim2"], cfg["output_dim"]
    ks = jax.random.split(key, 16)

    def unif(k, shape, bound):
        return jax.random.uniform(k, shape, jnp.float32, -bound, bound)

    p = {}
    p["embedding"] = jax.random.normal(ks[0], (V, E), jnp.float32)
    s1 = 1.0 / jnp.sqrt(H1)
    p["lstm1"] = dict(w_ih=unif(ks[1], (4 * H1, E), s1), w_hh=unif(ks[2], (4 * H1, H1), s1),
                      b_ih=unif(ks[3], (4 * H1,), s1), b_hh=unif(ks[4], (4 * H1,), s1))
    s2 = 1.0 / jnp.sqrt(H2)
    p["lstm2"] = dict(w_ih=unif(ks[5], (4 * H2, H1), s2), w_hh=unif(ks[6], (4 * H2, H2), s2),
                      b_ih=unif(ks[7], (4 * H2,), s2), b_hh=unif(ks[8], (4 * H2,), s2))
    fin1 = T * H2
    p["linear1"] = dict(w=unif(ks[9], (fin1, L1), 1.0 / jnp.sqrt(fin1)),
                        b=unif(ks[10], (L1,), 1.0 / jnp.sqrt(fin1)))
    p["linear2"] = dict(w=unif(ks[11], (L1, L2), 1.0 / jnp.sqrt(L1)),
                        b=unif(ks[12], (L2,), 1.0 / jnp.sqrt(L1)))
    p["output"] = dict(w=unif(ks[13], (L2, O), 1.0 / jnp.sqrt(L2)),
                       b=unif(ks[14], (O,), 1.0 / jnp.sqrt(L2)))
    return p


def _pad_block(a, rows, cols=LANES):
    out = jnp.zeros((rows, cols), a.dtype)
    return out.at[:a.shape[0], :a.shape[1]].set(a)


def prepare_kernel_params(p, cfg, bp):
    """One-time layout prep: transpose, combine biases, bf16-cast recurrent weights,
    and pack everything into one f32 blob + one bf16 blob (lane-padded to 128)."""
    V = cfg["vocab_size"]
    H1, H2 = cfg["lstm_hidden_dim1"], cfg["lstm_hidden_dim2"]
    T = cfg["seq_len"]

    emb = p["embedding"].astype(jnp.float32)                       # (V, E)
    wih1 = jnp.transpose(p["lstm1"]["w_ih"]).astype(jnp.float32)   # (E, 4H1)
    whh1 = jnp.transpose(p["lstm1"]["w_hh"]).astype(jnp.float32)   # (H1, 4H1)
    b1 = (p["lstm1"]["b_ih"] + p["lstm1"]["b_hh"]).reshape(1, -1).astype(jnp.float32)
    wih2 = jnp.transpose(p["lstm2"]["w_ih"]).astype(jnp.float32)   # (H1, 4H2)
    whh2 = jnp.transpose(p["lstm2"]["w_hh"]).astype(jnp.float32)   # (H2, 4H2)
    b2 = (p["lstm2"]["b_ih"] + p["lstm2"]["b_hh"]).reshape(1, -1).astype(jnp.float32)
    w1, c1 = p["linear1"]["w"], p["linear1"]["b"].reshape(1, -1)   # (T*H2, L1)
    w2, c2 = p["linear2"]["w"], p["linear2"]["b"].reshape(1, -1)
    w3, c3 = p["output"]["w"], p["output"]["b"].reshape(1, -1)

    # bf16 recurrent weights; layer-2 input & hidden weights stacked for the fused matmul
    whh1_bf = whh1.astype(jnp.bfloat16)
    w2s_bf = jnp.concatenate([wih2, whh2], axis=0).astype(jnp.bfloat16)  # (H1+H2, 4H2)

    f_entries = [
        ("emb", _pad_block(emb, V)),
        ("wih1", _pad_block(wih1, LANES)),                      # K padded: x is 128 lanes wide
        ("b1", _pad_block(jnp.tile(b1, (bp, 1)), bp)),          # bias replicated to BP rows
        ("b2", _pad_block(jnp.tile(b2, (bp, 1)), bp)),
        ("w1", _pad_block(w1, T * H2)),
        ("c1", _pad_block(jnp.tile(c1, (bp, 1)), bp)),
        ("w2", _pad_block(w2, LANES)),                          # K padded: z is 128 lanes wide
        ("c2", _pad_block(jnp.tile(c2, (bp, 1)), bp)),
        ("w3", _pad_block(w3, LANES)),
        ("c3", _pad_block(jnp.tile(c3, (bp, 1)), bp)),
    ]
    b_entries = [
        ("whh1", _pad_block(whh1_bf, H1)),
        ("w2s", _pad_block(w2s_bf, H1 + H2)),
    ]

    layout = {}
    fblocks, off = [], 0
    for name, blk in f_entries:                                  # f32 tile: 8-row aligned
        layout[f"off_{name}"] = off
        fblocks.append(blk)
        pad = (-blk.shape[0]) % 8
        if pad:
            fblocks.append(jnp.zeros((pad, LANES), jnp.float32))
        off += blk.shape[0] + pad
    bblocks, boff = [], 0
    for name, blk in b_entries:                                  # bf16 tile: 16-row aligned
        layout[f"off_{name}"] = boff
        bblocks.append(blk)
        pad = (-blk.shape[0]) % 16
        if pad:
            bblocks.append(jnp.zeros((pad, LANES), jnp.bfloat16))
        boff += blk.shape[0] + pad

    kp = dict(
        fblob=jnp.concatenate(fblocks, axis=0),
        bblob=jnp.concatenate(bblocks, axis=0),
        layout=layout,
        ref=dict(emb=emb, wih1=wih1, whh1=whh1, b1=b1, wih2=wih2, whh2=whh2, b2=b2,
                 w1=w1, c1=c1, w2=w2, c2=c2, w3=w3, c3=c3),
    )
    kp["fblob"] = jax.block_until_ready(kp["fblob"])
    kp["bblob"] = jax.block_until_ready(kp["bblob"])
    return kp


# --------------------------- pure-JAX references ---------------------------
def _ref_forward(rp, tokens, *, mixed):
    """mixed=False: exact f32 semantics of the PyTorch module.
    mixed=True : mirrors the kernel's bf16-recurrent / f32-accumulate policy."""
    hp = lax.Precision.HIGHEST
    B, T = tokens.shape
    H1, H2 = rp["whh1"].shape[0], rp["whh2"].shape[0]
    x = jnp.transpose(jnp.take(rp["emb"], tokens, axis=0), (1, 0, 2))   # (T, B, E)

    def maybe(a):
        return a.astype(jnp.bfloat16) if mixed else a

    whh1 = maybe(rp["whh1"])
    w2s = maybe(jnp.concatenate([rp["wih2"], rp["whh2"]], axis=0))
    h1 = jnp.zeros((B, H1), jnp.float32); c1 = jnp.zeros_like(h1)
    h2 = jnp.zeros((B, H2), jnp.float32); c2 = jnp.zeros_like(h2)
    h2s = []
    for t in range(T):
        g1 = (jnp.dot(x[t], rp["wih1"], precision=hp) + rp["b1"]
              + jnp.dot(maybe(h1), whh1, precision=hp, preferred_element_type=jnp.float32))
        ig, fg = jax.nn.sigmoid(g1[:, :H1]), jax.nn.sigmoid(g1[:, H1:2 * H1])
        gg, og = jnp.tanh(g1[:, 2 * H1:3 * H1]), jax.nn.sigmoid(g1[:, 3 * H1:])
        c1 = fg * c1 + ig * gg
        h1 = og * jnp.tanh(c1)
        xin = maybe(jnp.concatenate([h1, h2], axis=1))
        g2 = rp["b2"] + jnp.dot(xin, w2s, precision=hp, preferred_element_type=jnp.float32)
        ig, fg = jax.nn.sigmoid(g2[:, :H2]), jax.nn.sigmoid(g2[:, H2:2 * H2])
        gg, og = jnp.tanh(g2[:, 2 * H2:3 * H2]), jax.nn.sigmoid(g2[:, 3 * H2:])
        c2 = fg * c2 + ig * gg
        h2 = og * jnp.tanh(c2)
        h2s.append(h2)
    flat = jnp.concatenate(h2s, axis=1)                          # (B, T*H2), t-major
    y = jnp.maximum(jnp.dot(flat, rp["w1"], precision=hp) + rp["c1"], 0.0)
    y = jnp.maximum(jnp.dot(y, rp["w2"], precision=hp) + rp["c2"], 0.0)
    return jnp.dot(y, rp["w3"], precision=hp) + rp["c3"]


if __name__ == "__main__":
    cfg = dict(
        embedding_dim=32, vocab_size=32, seq_len=8, dropout_ratio=0.1,
        lstm_hidden_dim1=32, lstm_hidden_dim2=32,
        linear_hidden_dim1=64, linear_hidden_dim2=32, output_dim=8,
        bidirectional=False,
    )
    key = jax.random.PRNGKey(0)
    pkey, tkey = jax.random.split(key)
    params = init_params(pkey, cfg)

    B, T = 2, cfg["seq_len"]
    BP = ((B + 7) // 8) * 8                              # batch padded to sublane multiple
    kp = prepare_kernel_params(params, cfg, BP)

    # NOTE: token ids are assumed to lie in [0, vocab_size) (one-hot lookup, like nn.Embedding).
    tokens = jax.random.randint(tkey, (B, T), 0, cfg["vocab_size"], dtype=jnp.int32)

    fwd = build_forward(kp["layout"], T=T, BP=BP, V=cfg["vocab_size"],
                        H1=cfg["lstm_hidden_dim1"], H2=cfg["lstm_hidden_dim2"],
                        O=cfg["output_dim"])
    out = fwd(tokens, kp["fblob"], kp["bblob"])
    jax.block_until_ready(out)

    assert out.shape == (B, cfg["output_dim"])
    ref_mixed = _ref_forward(kp["ref"], tokens, mixed=True)    # same mixed-precision policy
    ref_f32 = _ref_forward(kp["ref"], tokens, mixed=False)     # full-f32 PyTorch semantics
    assert jnp.allclose(out, ref_mixed, rtol=1e-3, atol=1e-3), (out, ref_mixed)
    assert jnp.allclose(out, ref_f32, rtol=1e-2, atol=1e-2), (out, ref_f32)
    print("KERNEL_OK")
</pallas_src>

<mosaic_0001>
module attributes {stable_mosaic.version = 11 : i64} {
  func.func @_fused_kernel(%arg0: memref<64x1xi32, #tpu.memory_space<vmem>>, %arg1: memref<712x128xf32, #tpu.memory_space<vmem>>, %arg2: memref<96x128xbf16, #tpu.memory_space<vmem>>, %arg3: memref<8x128xf32, #tpu.memory_space<vmem>>) attributes {dimension_semantics = [], scalar_prefetch = 0 : i64, scratch_operands = 0 : i64, tpu.core_type = #tpu.core_type<tc>} {
    %c0 = arith.constant 0 : index
    %c0_0 = arith.constant 0 : index
    %0 = vector.load %arg0[%c0, %c0_0] : memref<64x1xi32, #tpu.memory_space<vmem>>, vector<64x1xi32>
    %1 = tpu.iota {dimensions = array<i32: 1>} : vector<64x32xi32>
    %2 = vector.broadcast %0 : vector<64x1xi32> to vector<64x32xi32>
    %3 = arith.cmpi eq, %2, %1 : vector<64x32xi32>
    %cst = arith.constant 1.000000e+00 : f32
    %cst_1 = arith.constant 0.000000e+00 : f32
    %4 = vector.broadcast %cst : f32 to vector<64x32xf32>
    %5 = vector.broadcast %cst_1 : f32 to vector<64x32xf32>
    %6 = arith.select %3, %4, %5 : vector<64x32xi1>, vector<64x32xf32>
    %c0_2 = arith.constant 0 : index
    %c0_3 = arith.constant 0 : index
    %7 = vector.load %arg1[%c0_2, %c0_3] : memref<712x128xf32, #tpu.memory_space<vmem>>, vector<32x128xf32>
    %cst_4 = arith.constant dense<0.000000e+00> : vector<64x128xf32>
    %8 = tpu.matmul %6, %7, %cst_4 {dimension_numbers = #tpu.dot_dimension_numbers<[1], [0], [0], [1], [0, 0, 1, 1], [], []>} : vector<64x32xf32>, vector<32x128xf32>, vector<64x128xf32> -> vector<64x128xf32>
    %c32 = arith.constant 32 : index
    %c0_5 = arith.constant 0 : index
    %9 = vector.load %arg1[%c32, %c0_5] : memref<712x128xf32, #tpu.memory_space<vmem>>, vector<128x128xf32>
    %cst_6 = arith.constant dense<0.000000e+00> : vector<64x128xf32>
    %10 = tpu.matmul %8, %9, %cst_6 {dimension_numbers = #tpu.dot_dimension_numbers<[1], [0], [0], [1], [0, 0, 1, 1], [], []>} : vector<64x128xf32>, vector<128x128xf32>, vector<64x128xf32> -> vector<64x128xf32>
    %c160 = arith.constant 160 : index
    %c0_7 = arith.constant 0 : index
    %11 = vector.load %arg1[%c160, %c0_7] : memref<712x128xf32, #tpu.memory_space<vmem>>, vector<8x128xf32>
    %c168 = arith.constant 168 : index
    %c0_8 = arith.constant 0 : index
    %12 = vector.load %arg1[%c168, %c0_8] : memref<712x128xf32, #tpu.memory_space<vmem>>, vector<8x128xf32>
    %c0_9 = arith.constant 0 : index
    %c0_10 = arith.constant 0 : index
    %13 = vector.load %arg2[%c0_9, %c0_10] : memref<96x128xbf16, #tpu.memory_space<vmem>>, vector<32x128xbf16>
    %c32_11 = arith.constant 32 : index
    %c0_12 = arith.constant 0 : index
    %14 = vector.load %arg2[%c32_11, %c0_12] : memref<96x128xbf16, #tpu.memory_space<vmem>>, vector<64x128xbf16>
    %cst_13 = arith.constant 0.000000e+00 : f32
    %15 = vector.broadcast %cst_13 : f32 to vector<8x32xf32>
    %cst_14 = arith.constant 0.000000e+00 : f32
    %16 = vector.broadcast %cst_14 : f32 to vector<8x32xf32>
    %cst_15 = arith.constant 0.000000e+00 : f32
    %17 = vector.broadcast %cst_15 : f32 to vector<8x32xf32>
    %cst_16 = arith.constant 0.000000e+00 : f32
    %18 = vector.broadcast %cst_16 : f32 to vector<8x32xf32>
    %19 = vector.extract_strided_slice %10 {offsets = [0, 0], sizes = [8, 128], strides = [1, 1]} : vector<64x128xf32> to vector<8x128xf32>
    %20 = arith.addf %19, %11 : vector<8x128xf32>
    %21 = arith.truncf %15 : vector<8x32xf32> to vector<8x32xbf16>
    %cst_17 = arith.constant dense<0.000000e+00> : vector<8x128xf32>
    %22 = tpu.matmul %21, %13, %cst_17 {dimension_numbers = #tpu.dot_dimension_numbers<[1], [0], [0], [1], [0, 0, 1, 1], [], []>} : vector<8x32xbf16>, vector<32x128xbf16>, vector<8x128xf32> -> vector<8x128xf32>
    %23 = arith.addf %20, %22 : vector<8x128xf32>
    %24 = arith.negf %23 : vector<8x128xf32>
    %25 = math.exp %24 : vector<8x128xf32>
    %cst_18 = arith.constant 1.000000e+00 : f32
    %26 = vector.broadcast %cst_18 : f32 to vector<8x128xf32>
    %27 = arith.addf %26, %25 : vector<8x128xf32>
    %28 = arith.divf %26, %27 : vector<8x128xf32>
    %29 = math.tanh %23 : vector<8x128xf32>
    %30 = vector.extract_strided_slice %28 {offsets = [0, 32], sizes = [8, 32], strides = [1, 1]} : vector<8x128xf32> to vector<8x32xf32>
    %31 = arith.mulf %30, %16 : vector<8x32xf32>
    %32 = vector.extract_strided_slice %28 {offsets = [0, 0], sizes = [8, 32], strides = [1, 1]} : vector<8x128xf32> to vector<8x32xf32>
    %33 = vector.extract_strided_slice %29 {offsets = [0, 64], sizes = [8, 32], strides = [1, 1]} : vector<8x128xf32> to vector<8x32xf32>
    %34 = arith.mulf %32, %33 : vector<8x32xf32>
    %35 = arith.addf %31, %34 : vector<8x32xf32>
    %36 = vector.extract_strided_slice %28 {offsets = [0, 96], sizes = [8, 32], strides = [1, 1]} : vector<8x128xf32> to vector<8x32xf32>
    %37 = math.tanh %35 : vector<8x32xf32>
    %38 = arith.mulf %36, %37 : vector<8x32xf32>
    %39 = tpu.concatenate %38, %17 in 1 : vector<8x32xf32>, vector<8x32xf32> -> vector<8x64xf32>
    %40 = arith.truncf %39 : vector<8x64xf32> to vector<8x64xbf16>
    %cst_19 = arith.constant dense<0.000000e+00> : vector<8x128xf32>
    %41 = tpu.matmul %40, %14, %cst_19 {dimension_numbers = #tpu.dot_dimension_numbers<[1], [0], [0], [1], [0, 0, 1, 1], [], []>} : vector<8x64xbf16>, vector<64x128xbf16>, vector<8x128xf32> -> vector<8x128xf32>
    %42 = arith.addf %12, %41 : vector<8x128xf32>
    %43 = arith.negf %42 : vector<8x128xf32>
    %44 = math.exp %43 : vector<8x128xf32>
    %cst_20 = arith.constant 1.000000e+00 : f32
    %45 = vector.broadcast %cst_20 : f32 to vector<8x128xf32>
    %46 = arith.addf %45, %44 : vector<8x128xf32>
    %47 = arith.divf %45, %46 : vector<8x128xf32>
    %48 = math.tanh %42 : vector<8x128xf32>
    %49 = vector.extract_strided_slice %47 {offsets = [0, 32], sizes = [8, 32], strides = [1, 1]} : vector<8x128xf32> to vector<8x32xf32>
    %50 = arith.mulf %49, %18 : vector<8x32xf32>
    %51 = vector.extract_strided_slice %47 {offsets = [0, 0], sizes = [8, 32], strides = [1, 1]} : vector<8x128xf32> to vector<8x32xf32>
    %52 = vector.extract_strided_slice %48 {offsets = [0, 64], sizes = [8, 32], strides = [1, 1]} : vector<8x128xf32> to vector<8x32xf32>
    %53 = arith.mulf %51, %52 : vector<8x32xf32>
    %54 = arith.addf %50, %53 : vector<8x32xf32>
    %55 = vector.extract_strided_slice %47 {offsets = [0, 96], sizes = [8, 32], strides = [1, 1]} : vector<8x128xf32> to vector<8x32xf32>
    %56 = math.tanh %54 : vector<8x32xf32>
    %57 = arith.mulf %55, %56 : vector<8x32xf32>
    %58 = vector.extract_strided_slice %10 {offsets = [8, 0], sizes = [8, 128], strides = [1, 1]} : vector<64x128xf32> to vector<8x128xf32>
    %59 = arith.addf %58, %11 : vector<8x128xf32>
    %60 = arith.truncf %38 : vector<8x32xf32> to vector<8x32xbf16>
    %cst_21 = arith.constant dense<0.000000e+00> : vector<8x128xf32>
    %61 = tpu.matmul %60, %13, %cst_21 {dimension_numbers = #tpu.dot_dimension_numbers<[1], [0], [0], [1], [0, 0, 1, 1], [], []>} : vector<8x32xbf16>, vector<32x128xbf16>, vector<8x128xf32> -> vector<8x128xf32>
    %62 = arith.addf %59, %61 : vector<8x128xf32>
    %63 = arith.negf %62 : vector<8x128xf32>
    %64 = math.exp %63 : vector<8x128xf32>
    %cst_22 = arith.constant 1.000000e+00 : f32
    %65 = vector.broadcast %cst_22 : f32 to vector<8x128xf32>
    %66 = arith.addf %65, %64 : vector<8x128xf32>
    %67 = arith.divf %65, %66 : vector<8x128xf32>
    %68 = math.tanh %62 : vector<8x128xf32>
    %69 = vector.extract_strided_slice %67 {offsets = [0, 32], sizes = [8, 32], strides = [1, 1]} : vector<8x128xf32> to vector<8x32xf32>
    %70 = arith.mulf %69, %35 : vector<8x32xf32>
    %71 = vector.extract_strided_slice %67 {offsets = [0, 0], sizes = [8, 32], strides = [1, 1]} : vector<8x128xf32> to vector<8x32xf32>
    %72 = vector.extract_strided_slice %68 {offsets = [0, 64], sizes = [8, 32], strides = [1, 1]} : vector<8x128xf32> to vector<8x32xf32>
    %73 = arith.mulf %71, %72 : vector<8x32xf32>
    %74 = arith.addf %70, %73 : vector<8x32xf32>
    %75 = vector.extract_strided_slice %67 {offsets = [0, 96], sizes = [8, 32], strides = [1, 1]} : vector<8x128xf32> to vector<8x32xf32>
    %76 = math.tanh %74 : vector<8x32xf32>
    %77 = arith.mulf %75, %76 : vector<8x32xf32>
    %78 = tpu.concatenate %77, %57 in 1 : vector<8x32xf32>, vector<8x32xf32> -> vector<8x64xf32>
    %79 = arith.truncf %78 : vector<8x64xf32> to vector<8x64xbf16>
    %cst_23 = arith.constant dense<0.000000e+00> : vector<8x128xf32>
    %80 = tpu.matmul %79, %14, %cst_23 {dimension_numbers = #tpu.dot_dimension_numbers<[1], [0], [0], [1], [0, 0, 1, 1], [], []>} : vector<8x64xbf16>, vector<64x128xbf16>, vector<8x128xf32> -> vector<8x128xf32>
    %81 = arith.addf %12, %80 : vector<8x128xf32>
    %82 = arith.negf %81 : vector<8x128xf32>
    %83 = math.exp %82 : vector<8x128xf32>
    %cst_24 = arith.constant 1.000000e+00 : f32
    %84 = vector.broadcast %cst_24 : f32 to vector<8x128xf32>
    %85 = arith.addf %84, %83 : vector<8x128xf32>
    %86 = arith.divf %84, %85 : vector<8x128xf32>
    %87 = math.tanh %81 : vector<8x128xf32>
    %88 = vector.extract_strided_slice %86 {offsets = [0, 32], sizes = [8, 32], strides = [1, 1]} : vector<8x128xf32> to vector<8x32xf32>
    %89 = arith.mulf %88, %54 : vector<8x32xf32>
    %90 = vector.extract_strided_slice %86 {offsets = [0, 0], sizes = [8, 32], strides = [1, 1]} : vector<8x128xf32> to vector<8x32xf32>
    %91 = vector.extract_strided_slice %87 {offsets = [0, 64], sizes = [8, 32], strides = [1, 1]} : vector<8x128xf32> to vector<8x32xf32>
    %92 = arith.mulf %90, %91 : vector<8x32xf32>
    %93 = arith.addf %89, %92 : vector<8x32xf32>
    %94 = vector.extract_strided_slice %86 {offsets = [0, 96], sizes = [8, 32], strides = [1, 1]} : vector<8x128xf32> to vector<8x32xf32>
    %95 = math.tanh %93 : vector<8x32xf32>
    %96 = arith.mulf %94, %95 : vector<8x32xf32>
    %97 = vector.extract_strided_slice %10 {offsets = [16, 0], sizes = [8, 128], strides = [1, 1]} : vector<64x128xf32> to vector<8x128xf32>
    %98 = arith.addf %97, %11 : vector<8x128xf32>
    %99 = arith.truncf %77 : vector<8x32xf32> to vector<8x32xbf16>
    %cst_25 = arith.constant dense<0.000000e+00> : vector<8x128xf32>
    %100 = tpu.matmul %99, %13, %cst_25 {dimension_numbers = #tpu.dot_dimension_numbers<[1], [0], [0], [1], [0, 0, 1, 1], [], []>} : vector<8x32xbf16>, vector<32x128xbf16>, vector<8x128xf32> -> vector<8x128xf32>
    %101 = arith.addf %98, %100 : vector<8x128xf32>
    %102 = arith.negf %101 : vector<8x128xf32>
    %103 = math.exp %102 : vector<8x128xf32>
    %cst_26 = arith.constant 1.000000e+00 : f32
    %104 = vector.broadcast %cst_26 : f32 to vector<8x128xf32>
    %105 = arith.addf %104, %103 : vector<8x128xf32>
    %106 = arith.divf %104, %105 : vector<8x128xf32>
    %107 = math.tanh %101 : vector<8x128xf32>
    %108 = vector.extract_strided_slice %106 {offsets = [0, 32], sizes = [8, 32], strides = [1, 1]} : vector<8x128xf32> to vector<8x32xf32>
    %109 = arith.mulf %108, %74 : vector<8x32xf32>
    %110 = vector.extract_strided_slice %106 {offsets = [0, 0], sizes = [8, 32], strides = [1, 1]} : vector<8x128xf32> to vector<8x32xf32>
    %111 = vector.extract_strided_slice %107 {offsets = [0, 64], sizes = [8, 32], strides = [1, 1]} : vector<8x128xf32> to vector<8x32xf32>
    %112 = arith.mulf %110, %111 : vector<8x32xf32>
    %113 = arith.addf %109, %112 : vector<8x32xf32>
    %114 = vector.extract_strided_slice %106 {offsets = [0, 96], sizes = [8, 32], strides = [1, 1]} : vector<8x128xf32> to vector<8x32xf32>
    %115 = math.tanh %113 : vector<8x32xf32>
    %116 = arith.mulf %114, %115 : vector<8x32xf32>
    %117 = tpu.concatenate %116, %96 in 1 : vector<8x32xf32>, vector<8x32xf32> -> vector<8x64xf32>
    %118 = arith.truncf %117 : vector<8x64xf32> to vector<8x64xbf16>
    %cst_27 = arith.constant dense<0.000000e+00> : vector<8x128xf32>
    %119 = tpu.matmul %118, %14, %cst_27 {dimension_numbers = #tpu.dot_dimension_numbers<[1], [0], [0], [1], [0, 0, 1, 1], [], []>} : vector<8x64xbf16>, vector<64x128xbf16>, vector<8x128xf32> -> vector<8x128xf32>
    %120 = arith.addf %12, %119 : vector<8x128xf32>
    %121 = arith.negf %120 : vector<8x128xf32>
    %122 = math.exp %121 : vector<8x128xf32>
    %cst_28 = arith.constant 1.000000e+00 : f32
    %123 = vector.broadcast %cst_28 : f32 to vector<8x128xf32>
    %124 = arith.addf %123, %122 : vector<8x128xf32>
    %125 = arith.divf %123, %124 : vector<8x128xf32>
    %126 = math.tanh %120 : vector<8x128xf32>
    %127 = vector.extract_strided_slice %125 {offsets = [0, 32], sizes = [8, 32], strides = [1, 1]} : vector<8x128xf32> to vector<8x32xf32>
    %128 = arith.mulf %127, %93 : vector<8x32xf32>
    %129 = vector.extract_strided_slice %125 {offsets = [0, 0], sizes = [8, 32], strides = [1, 1]} : vector<8x128xf32> to vector<8x32xf32>
    %130 = vector.extract_strided_slice %126 {offsets = [0, 64], sizes = [8, 32], strides = [1, 1]} : vector<8x128xf32> to vector<8x32xf32>
    %131 = arith.mulf %129, %130 : vector<8x32xf32>
    %132 = arith.addf %128, %131 : vector<8x32xf32>
    %133 = vector.extract_strided_slice %125 {offsets = [0, 96], sizes = [8, 32], strides = [1, 1]} : vector<8x128xf32> to vector<8x32xf32>
    %134 = math.tanh %132 : vector<8x32xf32>
    %135 = arith.mulf %133, %134 : vector<8x32xf32>
    %136 = vector.extract_strided_slice %10 {offsets = [24, 0], sizes = [8, 128], strides = [1, 1]} : vector<64x128xf32> to vector<8x128xf32>
    %137 = arith.addf %136, %11 : vector<8x128xf32>
    %138 = arith.truncf %116 : vector<8x32xf32> to vector<8x32xbf16>
    %cst_29 = arith.constant dense<0.000000e+00> : vector<8x128xf32>
    %139 = tpu.matmul %138, %13, %cst_29 {dimension_numbers = #tpu.dot_dimension_numbers<[1], [0], [0], [1], [0, 0, 1, 1], [], []>} : vector<8x32xbf16>, vector<32x128xbf16>, vector<8x128xf32> -> vector<8x128xf32>
    %140 = arith.addf %137, %139 : vector<8x128xf32>
    %141 = arith.negf %140 : vector<8x128xf32>
    %142 = math.exp %141 : vector<8x128xf32>
    %cst_30 = arith.constant 1.000000e+00 : f32
    %143 = vector.broadcast %cst_30 : f32 to vector<8x128xf32>
    %144 = arith.addf %143, %142 : vector<8x128xf32>
    %145 = arith.divf %143, %144 : vector<8x128xf32>
    %146 = math.tanh %140 : vector<8x128xf32>
    %147 = vector.extract_strided_slice %145 {offsets = [0, 32], sizes = [8, 32], strides = [1, 1]} : vector<8x128xf32> to vector<8x32xf32>
    %148 = arith.mulf %147, %113 : vector<8x32xf32>
    %149 = vector.extract_strided_slice %145 {offsets = [0, 0], sizes = [8, 32], strides = [1, 1]} : vector<8x128xf32> to vector<8x32xf32>
    %150 = vector.extract_strided_slice %146 {offsets = [0, 64], sizes = [8, 32], strides = [1, 1]} : vector<8x128xf32> to vector<8x32xf32>
    %151 = arith.mulf %149, %150 : vector<8x32xf32>
    %152 = arith.addf %148, %151 : vector<8x32xf32>
    %153 = vector.extract_strided_slice %145 {offsets = [0, 96], sizes = [8, 32], strides = [1, 1]} : vector<8x128xf32> to vector<8x32xf32>
    %154 = math.tanh %152 : vector<8x32xf32>
    %155 = arith.mulf %153, %154 : vector<8x32xf32>
    %156 = tpu.concatenate %155, %135 in 1 : vector<8x32xf32>, vector<8x32xf32> -> vector<8x64xf32>
    %157 = arith.truncf %156 : vector<8x64xf32> to vector<8x64xbf16>
    %cst_31 = arith.constant dense<0.000000e+00> : vector<8x128xf32>
    %158 = tpu.matmul %157, %14, %cst_31 {dimension_numbers = #tpu.dot_dimension_numbers<[1], [0], [0], [1], [0, 0, 1, 1], [], []>} : vector<8x64xbf16>, vector<64x128xbf16>, vector<8x128xf32> -> vector<8x128xf32>
    %159 = arith.addf %12, %158 : vector<8x128xf32>
    %160 = arith.negf %159 : vector<8x128xf32>
    %161 = math.exp %160 : vector<8x128xf32>
    %cst_32 = arith.constant 1.000000e+00 : f32
    %162 = vector.broadcast %cst_32 : f32 to vector<8x128xf32>
    %163 = arith.addf %162, %161 : vector<8x128xf32>
    %164 = arith.divf %162, %163 : vector<8x128xf32>
    %165 = math.tanh %159 : vector<8x128xf32>
    %166 = vector.extract_strided_slice %164 {offsets = [0, 32], sizes = [8, 32], strides = [1, 1]} : vector<8x128xf32> to vector<8x32xf32>
    %167 = arith.mulf %166, %132 : vector<8x32xf32>
    %168 = vector.extract_strided_slice %164 {offsets = [0, 0], sizes = [8, 32], strides = [1, 1]} : vector<8x128xf32> to vector<8x32xf32>
    %169 = vector.extract_strided_slice %165 {offsets = [0, 64], sizes = [8, 32], strides = [1, 1]} : vector<8x128xf32> to vector<8x32xf32>
    %170 = arith.mulf %168, %169 : vector<8x32xf32>
    %171 = arith.addf %167, %170 : vector<8x32xf32>
    %172 = vector.extract_strided_slice %164 {offsets = [0, 96], sizes = [8, 32], strides = [1, 1]} : vector<8x128xf32> to vector<8x32xf32>
    %173 = math.tanh %171 : vector<8x32xf32>
    %174 = arith.mulf %172, %173 : vector<8x32xf32>
    %175 = vector.extract_strided_slice %10 {offsets = [32, 0], sizes = [8, 128], strides = [1, 1]} : vector<64x128xf32> to vector<8x128xf32>
    %176 = arith.addf %175, %11 : vector<8x128xf32>
    %177 = arith.truncf %155 : vector<8x32xf32> to vector<8x32xbf16>
    %cst_33 = arith.constant dense<0.000000e+00> : vector<8x128xf32>
    %178 = tpu.matmul %177, %13, %cst_33 {dimension_numbers = #tpu.dot_dimension_numbers<[1], [0], [0], [1], [0, 0, 1, 1], [], []>} : vector<8x32xbf16>, vector<32x128xbf16>, vector<8x128xf32> -> vector<8x128xf32>
    %179 = arith.addf %176, %178 : vector<8x128xf32>
    %180 = arith.negf %179 : vector<8x128xf32>
    %181 = math.exp %180 : vector<8x128xf32>
    %cst_34 = arith.constant 1.000000e+00 : f32
    %182 = vector.broadcast %cst_34 : f32 to vector<8x128xf32>
    %183 = arith.addf %182, %181 : vector<8x128xf32>
    %184 = arith.divf %182, %183 : vector<8x128xf32>
    %185 = math.tanh %179 : vector<8x128xf32>
    %186 = vector.extract_strided_slice %184 {offsets = [0, 32], sizes = [8, 32], strides = [1, 1]} : vector<8x128xf32> to vector<8x32xf32>
    %187 = arith.mulf %186, %152 : vector<8x32xf32>
    %188 = vector.extract_strided_slice %184 {offsets = [0, 0], sizes = [8, 32], strides = [1, 1]} : vector<8x128xf32> to vector<8x32xf32>
    %189 = vector.extract_strided_slice %185 {offsets = [0, 64], sizes = [8, 32], strides = [1, 1]} : vector<8x128xf32> to vector<8x32xf32>
    %190 = arith.mulf %188, %189 : vector<8x32xf32>
    %191 = arith.addf %187, %190 : vector<8x32xf32>
    %192 = vector.extract_strided_slice %184 {offsets = [0, 96], sizes = [8, 32], strides = [1, 1]} : vector<8x128xf32> to vector<8x32xf32>
    %193 = math.tanh %191 : vector<8x32xf32>
    %194 = arith.mulf %192, %193 : vector<8x32xf32>
    %195 = tpu.concatenate %194, %174 in 1 : vector<8x32xf32>, vector<8x32xf32> -> vector<8x64xf32>
    %196 = arith.truncf %195 : vector<8x64xf32> to vector<8x64xbf16>
    %cst_35 = arith.constant dense<0.000000e+00> : vector<8x128xf32>
    %197 = tpu.matmul %196, %14, %cst_35 {dimension_numbers = #tpu.dot_dimension_numbers<[1], [0], [0], [1], [0, 0, 1, 1], [], []>} : vector<8x64xbf16>, vector<64x128xbf16>, vector<8x128xf32> -> vector<8x128xf32>
    %198 = arith.addf %12, %197 : vector<8x128xf32>
    %199 = arith.negf %198 : vector<8x128xf32>
    %200 = math.exp %199 : vector<8x128xf32>
    %cst_36 = arith.constant 1.000000e+00 : f32
    %201 = vector.broadcast %cst_36 : f32 to vector<8x128xf32>
    %202 = arith.addf %201, %200 : vector<8x128xf32>
    %203 = arith.divf %201, %202 : vector<8x128xf32>
    %204 = math.tanh %198 : vector<8x128xf32>
    %205 = vector.extract_strided_slice %203 {offsets = [0, 32], sizes = [8, 32], strides = [1, 1]} : vector<8x128xf32> to vector<8x32xf32>
    %206 = arith.mulf %205, %171 : vector<8x32xf32>
    %207 = vector.extract_strided_slice %203 {offsets = [0, 0], sizes = [8, 32], strides = [1, 1]} : vector<8x128xf32> to vector<8x32xf32>
    %208 = vector.extract_strided_slice %204 {offsets = [0, 64], sizes = [8, 32], strides = [1, 1]} : vector<8x128xf32> to vector<8x32xf32>
    %209 = arith.mulf %207, %208 : vector<8x32xf32>
    %210 = arith.addf %206, %209 : vector<8x32xf32>
    %211 = vector.extract_strided_slice %203 {offsets = [0, 96], sizes = [8, 32], strides = [1, 1]} : vector<8x128xf32> to vector<8x32xf32>
    %212 = math.tanh %210 : vector<8x32xf32>
    %213 = arith.mulf %211, %212 : vector<8x32xf32>
    %214 = vector.extract_strided_slice %10 {offsets = [40, 0], sizes = [8, 128], strides = [1, 1]} : vector<64x128xf32> to vector<8x128xf32>
    %215 = arith.addf %214, %11 : vector<8x128xf32>
    %216 = arith.truncf %194 : vector<8x32xf32> to vector<8x32xbf16>
    %cst_37 = arith.constant dense<0.000000e+00> : vector<8x128xf32>
    %217 = tpu.matmul %216, %13, %cst_37 {dimension_numbers = #tpu.dot_dimension_numbers<[1], [0], [0], [1], [0, 0, 1, 1], [], []>} : vector<8x32xbf16>, vector<32x128xbf16>, vector<8x128xf32> -> vector<8x128xf32>
    %218 = arith.addf %215, %217 : vector<8x128xf32>
    %219 = arith.negf %218 : vector<8x128xf32>
    %220 = math.exp %219 : vector<8x128xf32>
    %cst_38 = arith.constant 1.000000e+00 : f32
    %221 = vector.broadcast %cst_38 : f32 to vector<8x128xf32>
    %222 = arith.addf %221, %220 : vector<8x128xf32>
    %223 = arith.divf %221, %222 : vector<8x128xf32>
    %224 = math.tanh %218 : vector<8x128xf32>
    %225 = vector.extract_strided_slice %223 {offsets = [0, 32], sizes = [8, 32], strides = [1, 1]} : vector<8x128xf32> to vector<8x32xf32>
    %226 = arith.mulf %225, %191 : vector<8x32xf32>
    %227 = vector.extract_strided_slice %223 {offsets = [0, 0], sizes = [8, 32], strides = [1, 1]} : vector<8x128xf32> to vector<8x32xf32>
    %228 = vector.extract_strided_slice %224 {offsets = [0, 64], sizes = [8, 32], strides = [1, 1]} : vector<8x128xf32> to vector<8x32xf32>
    %229 = arith.mulf %227, %228 : vector<8x32xf32>
    %230 = arith.addf %226, %229 : vector<8x32xf32>
    %231 = vector.extract_strided_slice %223 {offsets = [0, 96], sizes = [8, 32], strides = [1, 1]} : vector<8x128xf32> to vector<8x32xf32>
    %232 = math.tanh %230 : vector<8x32xf32>
    %233 = arith.mulf %231, %232 : vector<8x32xf32>
    %234 = tpu.concatenate %233, %213 in 1 : vector<8x32xf32>, vector<8x32xf32> -> vector<8x64xf32>
    %235 = arith.truncf %234 : vector<8x64xf32> to vector<8x64xbf16>
    %cst_39 = arith.constant dense<0.000000e+00> : vector<8x128xf32>
    %236 = tpu.matmul %235, %14, %cst_39 {dimension_numbers = #tpu.dot_dimension_numbers<[1], [0], [0], [1], [0, 0, 1, 1], [], []>} : vector<8x64xbf16>, vector<64x128xbf16>, vector<8x128xf32> -> vector<8x128xf32>
    %237 = arith.addf %12, %236 : vector<8x128xf32>
    %238 = arith.negf %237 : vector<8x128xf32>
    %239 = math.exp %238 : vector<8x128xf32>
    %cst_40 = arith.constant 1.000000e+00 : f32
    %240 = vector.broadcast %cst_40 : f32 to vector<8x128xf32>
    %241 = arith.addf %240, %239 : vector<8x128xf32>
    %242 = arith.divf %240, %241 : vector<8x128xf32>
    %243 = math.tanh %237 : vector<8x128xf32>
    %244 = vector.extract_strided_slice %242 {offsets = [0, 32], sizes = [8, 32], strides = [1, 1]} : vector<8x128xf32> to vector<8x32xf32>
    %245 = arith.mulf %244, %210 : vector<8x32xf32>
    %246 = vector.extract_strided_slice %242 {offsets = [0, 0], sizes = [8, 32], strides = [1, 1]} : vector<8x128xf32> to vector<8x32xf32>
    %247 = vector.extract_strided_slice %243 {offsets = [0, 64], sizes = [8, 32], strides = [1, 1]} : vector<8x128xf32> to vector<8x32xf32>
    %248 = arith.mulf %246, %247 : vector<8x32xf32>
    %249 = arith.addf %245, %248 : vector<8x32xf32>
    %250 = vector.extract_strided_slice %242 {offsets = [0, 96], sizes = [8, 32], strides = [1, 1]} : vector<8x128xf32> to vector<8x32xf32>
    %251 = math.tanh %249 : vector<8x32xf32>
    %252 = arith.mulf %250, %251 : vector<8x32xf32>
    %253 = vector.extract_strided_slice %10 {offsets = [48, 0], sizes = [8, 128], strides = [1, 1]} : vector<64x128xf32> to vector<8x128xf32>
    %254 = arith.addf %253, %11 : vector<8x128xf32>
    %255 = arith.truncf %233 : vector<8x32xf32> to vector<8x32xbf16>
    %cst_41 = arith.constant dense<0.000000e+00> : vector<8x128xf32>
    %256 = tpu.matmul %255, %13, %cst_41 {dimension_numbers = #tpu.dot_dimension_numbers<[1], [0], [0], [1], [0, 0, 1, 1], [], []>} : vector<8x32xbf16>, vector<32x128xbf16>, vector<8x128xf32> -> vector<8x128xf32>
    %257 = arith.addf %254, %256 : vector<8x128xf32>
    %258 = arith.negf %257 : vector<8x128xf32>
    %259 = math.exp %258 : vector<8x128xf32>
    %cst_42 = arith.constant 1.000000e+00 : f32
    %260 = vector.broadcast %cst_42 : f32 to vector<8x128xf32>
    %261 = arith.addf %260, %259 : vector<8x128xf32>
    %262 = arith.divf %260, %261 : vector<8x128xf32>
    %263 = math.tanh %257 : vector<8x128xf32>
    %264 = vector.extract_strided_slice %262 {offsets = [0, 32], sizes = [8, 32], strides = [1, 1]} : vector<8x128xf32> to vector<8x32xf32>
    %265 = arith.mulf %264, %230 : vector<8x32xf32>
    %266 = vector.extract_strided_slice %262 {offsets = [0, 0], sizes = [8, 32], strides = [1, 1]} : vector<8x128xf32> to vector<8x32xf32>
    %267 = vector.extract_strided_slice %263 {offsets = [0, 64], sizes = [8, 32], strides = [1, 1]} : vector<8x128xf32> to vector<8x32xf32>
    %268 = arith.mulf %266, %267 : vector<8x32xf32>
    %269 = arith.addf %265, %268 : vector<8x32xf32>
    %270 = vector.extract_strided_slice %262 {offsets = [0, 96], sizes = [8, 32], strides = [1, 1]} : vector<8x128xf32> to vector<8x32xf32>
    %271 = math.tanh %269 : vector<8x32xf32>
    %272 = arith.mulf %270, %271 : vector<8x32xf32>
    %273 = tpu.concatenate %272, %252 in 1 : vector<8x32xf32>, vector<8x32xf32> -> vector<8x64xf32>
    %274 = arith.truncf %273 : vector<8x64xf32> to vector<8x64xbf16>
    %cst_43 = arith.constant dense<0.000000e+00> : vector<8x128xf32>
    %275 = tpu.matmul %274, %14, %cst_43 {dimension_numbers = #tpu.dot_dimension_numbers<[1], [0], [0], [1], [0, 0, 1, 1], [], []>} : vector<8x64xbf16>, vector<64x128xbf16>, vector<8x128xf32> -> vector<8x128xf32>
    %276 = arith.addf %12, %275 : vector<8x128xf32>
    %277 = arith.negf %276 : vector<8x128xf32>
    %278 = math.exp %277 : vector<8x128xf32>
    %cst_44 = arith.constant 1.000000e+00 : f32
    %279 = vector.broadcast %cst_44 : f32 to vector<8x128xf32>
    %280 = arith.addf %279, %278 : vector<8x128xf32>
    %281 = arith.divf %279, %280 : vector<8x128xf32>
    %282 = math.tanh %276 : vector<8x128xf32>
    %283 = vector.extract_strided_slice %281 {offsets = [0, 32], sizes = [8, 32], strides = [1, 1]} : vector<8x128xf32> to vector<8x32xf32>
    %284 = arith.mulf %283, %249 : vector<8x32xf32>
    %285 = vector.extract_strided_slice %281 {offsets = [0, 0], sizes = [8, 32], strides = [1, 1]} : vector<8x128xf32> to vector<8x32xf32>
    %286 = vector.extract_strided_slice %282 {offsets = [0, 64], sizes = [8, 32], strides = [1, 1]} : vector<8x128xf32> to vector<8x32xf32>
    %287 = arith.mulf %285, %286 : vector<8x32xf32>
    %288 = arith.addf %284, %287 : vector<8x32xf32>
    %289 = vector.extract_strided_slice %281 {offsets = [0, 96], sizes = [8, 32], strides = [1, 1]} : vector<8x128xf32> to vector<8x32xf32>
    %290 = math.tanh %288 : vector<8x32xf32>
    %291 = arith.mulf %289, %290 : vector<8x32xf32>
    %292 = vector.extract_strided_slice %10 {offsets = [56, 0], sizes = [8, 128], strides = [1, 1]} : vector<64x128xf32> to vector<8x128xf32>
    %293 = arith.addf %292, %11 : vector<8x128xf32>
    %294 = arith.truncf %272 : vector<8x32xf32> to vector<8x32xbf16>
    %cst_45 = arith.constant dense<0.000000e+00> : vector<8x128xf32>
    %295 = tpu.matmul %294, %13, %cst_45 {dimension_numbers = #tpu.dot_dimension_numbers<[1], [0], [0], [1], [0, 0, 1, 1], [], []>} : vector<8x32xbf16>, vector<32x128xbf16>, vector<8x128xf32> -> vector<8x128xf32>
    %296 = arith.addf %293, %295 : vector<8x128xf32>
    %297 = arith.negf %296 : vector<8x128xf32>
    %298 = math.exp %297 : vector<8x128xf32>
    %cst_46 = arith.constant 1.000000e+00 : f32
    %299 = vector.broadcast %cst_46 : f32 to vector<8x128xf32>
    %300 = arith.addf %299, %298 : vector<8x128xf32>
    %301 = arith.divf %299, %300 : vector<8x128xf32>
    %302 = math.tanh %296 : vector<8x128xf32>
    %303 = vector.extract_strided_slice %301 {offsets = [0, 32], sizes = [8, 32], strides = [1, 1]} : vector<8x128xf32> to vector<8x32xf32>
    %304 = arith.mulf %303, %269 : vector<8x32xf32>
    %305 = vector.extract_strided_slice %301 {offsets = [0, 0], sizes = [8, 32], strides = [1, 1]} : vector<8x128xf32> to vector<8x32xf32>
    %306 = vector.extract_strided_slice %302 {offsets = [0, 64], sizes = [8, 32], strides = [1, 1]} : vector<8x128xf32> to vector<8x32xf32>
    %307 = arith.mulf %305, %306 : vector<8x32xf32>
    %308 = arith.addf %304, %307 : vector<8x32xf32>
    %309 = vector.extract_strided_slice %301 {offsets = [0, 96], sizes = [8, 32], strides = [1, 1]} : vector<8x128xf32> to vector<8x32xf32>
    %310 = math.tanh %308 : vector<8x32xf32>
    %311 = arith.mulf %309, %310 : vector<8x32xf32>
    %312 = tpu.concatenate %311, %291 in 1 : vector<8x32xf32>, vector<8x32xf32> -> vector<8x64xf32>
    %313 = arith.truncf %312 : vector<8x64xf32> to vector<8x64xbf16>
    %cst_47 = arith.constant dense<0.000000e+00> : vector<8x128xf32>
    %314 = tpu.matmul %313, %14, %cst_47 {dimension_numbers = #tpu.dot_dimension_numbers<[1], [0], [0], [1], [0, 0, 1, 1], [], []>} : vector<8x64xbf16>, vector<64x128xbf16>, vector<8x128xf32> -> vector<8x128xf32>
    %315 = arith.addf %12, %314 : vector<8x128xf32>
    %316 = arith.negf %315 : vector<8x128xf32>
    %317 = math.exp %316 : vector<8x128xf32>
    %cst_48 = arith.constant 1.000000e+00 : f32
    %318 = vector.broadcast %cst_48 : f32 to vector<8x128xf32>
    %319 = arith.addf %318, %317 : vector<8x128xf32>
    %320 = arith.divf %318, %319 : vector<8x128xf32>
    %321 = math.tanh %315 : vector<8x128xf32>
    %322 = vector.extract_strided_slice %320 {offsets = [0, 32], sizes = [8, 32], strides = [1, 1]} : vector<8x128xf32> to vector<8x32xf32>
    %323 = arith.mulf %322, %288 : vector<8x32xf32>
    %324 = vector.extract_strided_slice %320 {offsets = [0, 0], sizes = [8, 32], strides = [1, 1]} : vector<8x128xf32> to vector<8x32xf32>
    %325 = vector.extract_strided_slice %321 {offsets = [0, 64], sizes = [8, 32], strides = [1, 1]} : vector<8x128xf32> to vector<8x32xf32>
    %326 = arith.mulf %324, %325 : vector<8x32xf32>
    %327 = arith.addf %323, %326 : vector<8x32xf32>
    %328 = vector.extract_strided_slice %320 {offsets = [0, 96], sizes = [8, 32], strides = [1, 1]} : vector<8x128xf32> to vector<8x32xf32>
    %329 = math.tanh %327 : vector<8x32xf32>
    %330 = arith.mulf %328, %329 : vector<8x32xf32>
    %c432 = arith.constant 432 : index
    %c0_49 = arith.constant 0 : index
    %331 = vector.load %arg1[%c432, %c0_49] : memref<712x128xf32, #tpu.memory_space<vmem>>, vector<8x128xf32>
    %c176 = arith.constant 176 : index
    %c0_50 = arith.constant 0 : index
    %332 = vector.load %arg1[%c176, %c0_50] : memref<712x128xf32, #tpu.memory_space<vmem>>, vector<32x128xf32>
    %cst_51 = arith.constant dense<0.000000e+00> : vector<8x128xf32>
    %333 = tpu.matmul %57, %332, %cst_51 {dimension_numbers = #tpu.dot_dimension_numbers<[1], [0], [0], [1], [0, 0, 1, 1], [], []>} : vector<8x32xf32>, vector<32x128xf32>, vector<8x128xf32> -> vector<8x128xf32>
    %334 = arith.addf %331, %333 : vector<8x128xf32>
    %c208 = arith.constant 208 : index
    %c0_52 = arith.constant 0 : index
    %335 = vector.load %arg1[%c208, %c0_52] : memref<712x128xf32, #tpu.memory_space<vmem>>, vector<32x128xf32>
    %cst_53 = arith.constant dense<0.000000e+00> : vector<8x128xf32>
    %336 = tpu.matmul %96, %335, %cst_53 {dimension_numbers = #tpu.dot_dimension_numbers<[1], [0], [0], [1], [0, 0, 1, 1], [], []>} : vector<8x32xf32>, vector<32x128xf32>, vector<8x128xf32> -> vector<8x128xf32>
    %337 = arith.addf %334, %336 : vector<8x128xf32>
    %c240 = arith.constant 240 : index
    %c0_54 = arith.constant 0 : index
    %338 = vector.load %arg1[%c240, %c0_54] : memref<712x128xf32, #tpu.memory_space<vmem>>, vector<32x128xf32>
    %cst_55 = arith.constant dense<0.000000e+00> : vector<8x128xf32>
    %339 = tpu.matmul %135, %338, %cst_55 {dimension_numbers = #tpu.dot_dimension_numbers<[1], [0], [0], [1], [0, 0, 1, 1], [], []>} : vector<8x32xf32>, vector<32x128xf32>, vector<8x128xf32> -> vector<8x128xf32>
    %340 = arith.addf %337, %339 : vector<8x128xf32>
    %c272 = arith.constant 272 : index
    %c0_56 = arith.constant 0 : index
    %341 = vector.load %arg1[%c272, %c0_56] : memref<712x128xf32, #tpu.memory_space<vmem>>, vector<32x128xf32>
    %cst_57 = arith.constant dense<0.000000e+00> : vector<8x128xf32>
    %342 = tpu.matmul %174, %341, %cst_57 {dimension_numbers = #tpu.dot_dimension_numbers<[1], [0], [0], [1], [0, 0, 1, 1], [], []>} : vector<8x32xf32>, vector<32x128xf32>, vector<8x128xf32> -> vector<8x128xf32>
    %343 = arith.addf %340, %342 : vector<8x128xf32>
    %c304 = arith.constant 304 : index
    %c0_58 = arith.constant 0 : index
    %344 = vector.load %arg1[%c304, %c0_58] : memref<712x128xf32, #tpu.memory_space<vmem>>, vector<32x128xf32>
    %cst_59 = arith.constant dense<0.000000e+00> : vector<8x128xf32>
    %345 = tpu.matmul %213, %344, %cst_59 {dimension_numbers = #tpu.dot_dimension_numbers<[1], [0], [0], [1], [0, 0, 1, 1], [], []>} : vector<8x32xf32>, vector<32x128xf32>, vector<8x128xf32> -> vector<8x128xf32>
    %346 = arith.addf %343, %345 : vector<8x128xf32>
    %c336 = arith.constant 336 : index
    %c0_60 = arith.constant 0 : index
    %347 = vector.load %arg1[%c336, %c0_60] : memref<712x128xf32, #tpu.memory_space<vmem>>, vector<32x128xf32>
    %cst_61 = arith.constant dense<0.000000e+00> : vector<8x128xf32>
    %348 = tpu.matmul %252, %347, %cst_61 {dimension_numbers = #tpu.dot_dimension_numbers<[1], [0], [0], [1], [0, 0, 1, 1], [], []>} : vector<8x32xf32>, vector<32x128xf32>, vector<8x128xf32> -> vector<8x128xf32>
    %349 = arith.addf %346, %348 : vector<8x128xf32>
    %c368 = arith.constant 368 : index
    %c0_62 = arith.constant 0 : index
    %350 = vector.load %arg1[%c368, %c0_62] : memref<712x128xf32, #tpu.memory_space<vmem>>, vector<32x128xf32>
    %cst_63 = arith.constant dense<0.000000e+00> : vector<8x128xf32>
    %351 = tpu.matmul %291, %350, %cst_63 {dimension_numbers = #tpu.dot_dimension_numbers<[1], [0], [0], [1], [0, 0, 1, 1], [], []>} : vector<8x32xf32>, vector<32x128xf32>, vector<8x128xf32> -> vector<8x128xf32>
    %352 = arith.addf %349, %351 : vector<8x128xf32>
    %c400 = arith.constant 400 : index
    %c0_64 = arith.constant 0 : index
    %353 = vector.load %arg1[%c400, %c0_64] : memref<712x128xf32, #tpu.memory_space<vmem>>, vector<32x128xf32>
    %cst_65 = arith.constant dense<0.000000e+00> : vector<8x128xf32>
    %354 = tpu.matmul %330, %353, %cst_65 {dimension_numbers = #tpu.dot_dimension_numbers<[1], [0], [0], [1], [0, 0, 1, 1], [], []>} : vector<8x32xf32>, vector<32x128xf32>, vector<8x128xf32> -> vector<8x128xf32>
    %355 = arith.addf %352, %354 : vector<8x128xf32>
    %cst_66 = arith.constant 0.000000e+00 : f32
    %356 = vector.broadcast %cst_66 : f32 to vector<8x128xf32>
    %357 = arith.maximumf %355, %356 : vector<8x128xf32>
    %c440 = arith.constant 440 : index
    %c0_67 = arith.constant 0 : index
    %358 = vector.load %arg1[%c440, %c0_67] : memref<712x128xf32, #tpu.memory_space<vmem>>, vector<128x128xf32>
    %cst_68 = arith.constant dense<0.000000e+00> : vector<8x128xf32>
    %359 = tpu.matmul %357, %358, %cst_68 {dimension_numbers = #tpu.dot_dimension_numbers<[1], [0], [0], [1], [0, 0, 1, 1], [], []>} : vector<8x128xf32>, vector<128x128xf32>, vector<8x128xf32> -> vector<8x128xf32>
    %c568 = arith.constant 568 : index
    %c0_69 = arith.constant 0 : index
    %360 = vector.load %arg1[%c568, %c0_69] : memref<712x128xf32, #tpu.memory_space<vmem>>, vector<8x128xf32>
    %361 = arith.addf %359, %360 : vector<8x128xf32>
    %cst_70 = arith.constant 0.000000e+00 : f32
    %362 = vector.broadcast %cst_70 : f32 to vector<8x128xf32>
    %363 = arith.maximumf %361, %362 : vector<8x128xf32>
    %c576 = arith.constant 576 : index
    %c0_71 = arith.constant 0 : index
    %364 = vector.load %arg1[%c576, %c0_71] : memref<712x128xf32, #tpu.memory_space<vmem>>, vector<128x128xf32>
    %cst_72 = arith.constant dense<0.000000e+00> : vector<8x128xf32>
    %365 = tpu.matmul %363, %364, %cst_72 {dimension_numbers = #tpu.dot_dimension_numbers<[1], [0], [0], [1], [0, 0, 1, 1], [], []>} : vector<8x128xf32>, vector<128x128xf32>, vector<8x128xf32> -> vector<8x128xf32>
    %c704 = arith.constant 704 : index
    %c0_73 = arith.constant 0 : index
    %366 = vector.load %arg1[%c704, %c0_73] : memref<712x128xf32, #tpu.memory_space<vmem>>, vector<8x128xf32>
    %367 = arith.addf %365, %366 : vector<8x128xf32>
    %c0_74 = arith.constant 0 : index
    %c0_75 = arith.constant 0 : index
    %368 = vector.load %arg3[%c0_74, %c0_75] : memref<8x128xf32, #tpu.memory_space<vmem>>, vector<8x128xf32>
    tpu.vector_store %arg3[%c0_74, %c0_75], %367 {strides = array<i32>} : memref<8x128xf32, #tpu.memory_space<vmem>>, vector<8x128xf32>,
    return
  }
}

</mosaic_0001>

<bundles_post_ra>
// kernel: fwd.1
= control target key start
LH: loop header
LB: loop body
LE: loop exit
PB: predicated region body
PF: predicated region fallthrough
CT: control target
= control target key end

     0   :  { %8 = vsyncpa [#allocation3], 0  ;;  %s1800_s15 = smov [#allocation2]   ;;  %s1801_s17 = smov 128   ;;  %s2193_s0 = inlined_call_operand.vmem [shape: s32[64,1], index: 0, kind: input, shape index: {}]   ;;  %s2194_s1 = inlined_call_operand.hbm [shape: f32[712,128], index: 1, kind: input, shape index: {}]   ;;  %s2195_s2 = inlined_call_operand.vmem [shape: bf16[96,128], index: 2, kind: input, shape index: {}]   ;;  %s2196_s3 = inlined_call_operand.vmem [shape: f32[8,128], index: 3, kind: output, shape index: {}]  }
   0x1   :  { %s15_s14 = sshll.u32 %s2194_s1, 4  ;;  %s17_s16 = sshll.u32 %s1800_s15, 4  ;;  %s16_s14 = int_to_ptr.hbm [resolvable:$true] %s15_s14  ;;  %s18_s16 = int_to_ptr.vmem [resolvable:$true] %s17_s16 }
   0x2   :  { %s1802_s18 = smov 8  }
   0x3   :  { %23 = dma.hbm_to_vmem [thread:$0]  %s16_s14, 11392, %s18_s16, [#allocation3], %s1801_s17, %s1801_s17, %s1802_s18  }
   0x4   :  { %1798 = dma.done.wait [#allocation3], 11392  }
   0x5   :  { %1799 = vsyncadd [#allocation3], 4294955904  ;;  %v1803_v0 = vmov 0   ;;  %v31_v1 = vld [vmem:[%s2193_s0] sm:$0xff]  ;;  %v38_v2 = vld [vmem:[%s2193_s0 + $0x38] sm:$0xff]  ;;  %v39_v18 = vlaneseq  ;;  %vm85_vm0 = vcmask 261120  }
   0x6   :  { %1639 = vset.pattern.permute.xlu0 %v1803_v0  ;;  %1640 = vset.pattern.permute.xlu1 %v1803_v0  ;;  %v84_v3 = vld [vmem:[#allocation2 + $0x18] sm:$0xff]  ;;  %v83_v4 = vld [vmem:[#allocation2 + $0x10] sm:$0xff]  ;;  %v82_v5 = vld [vmem:[#allocation2 + $0x8] sm:$0xff]  ;;  %v1804_v26 = vmov 0.0   ;;  %s1805_s30 = smov 64   ;;  %s1806_s4 = smov 32  }
   0x7   :  { %1641 = vset.pattern.permute.xlu2 %v1803_v0  ;;  %42 = vperm.xlu0 %1639, %v31_v1   ;;  %v37_v6 = vld [vmem:[%s2193_s0 + $0x30] sm:$0xff]  ;;  %v81_v7 = vld [vmem:[#allocation2] sm:$0xff]  ;;  %v166_v8 = vld [vmem:[#allocation2 + $0x98] sm:$0xff]  ;;  %v1856_v21 = vand.u32 127, %v39_v18  ;;  %vm319_vm10 = vcmask 523264  }
   0x8   :  { %63 = vperm.xlu1 %1640, %v38_v2   ;;  %122 = vmatpush.msra.mxu0 %v84_v3  ;;  %v165_v9 = vld [vmem:[#allocation2 + $0x90] sm:$0xff]  ;;  %v164_v10 = vld [vmem:[#allocation2 + $0x88] sm:$0xff]  ;;  %v163_v11 = vld [vmem:[#allocation2 + $0x80] sm:$0xff] }
   0x9   :  { %1628 = vmatpush.msra.mxu2 %v84_v3  ;;  %167 = vmatpush.msra.mxu1 %v166_v8  ;;  %v162_v12 = vld [vmem:[#allocation2 + $0x78] sm:$0xff]  ;;  %v161_v13 = vld [vmem:[#allocation2 + $0x70] sm:$0xff]  ;;  %v1845_v14 = vld [vmem:[%s2195_s2 + $0x8] sm:$0xff] }
   0xa   :  { %123 = vmatpush.msra.mxu0 %v83_v4  ;;  %v160_v15 = vld [vmem:[#allocation2 + $0x68] sm:$0xff]  ;;  %v1851_v16 = vld [vmem:[%s2195_s2] sm:$0xff]  ;;  %v158_v19 = vld [vmem:[#allocation2 + $0x58] sm:$0xff] }
   0xb   :  { %1629 = vmatpush.msra.mxu2 %v83_v4  ;;  %168 = vmatpush.msra.mxu1 %v165_v9  ;;  %v159_v17 = vld [vmem:[#allocation2 + $0x60] sm:$0xff]  ;;  %v157_v20 = vld [vmem:[#allocation2 + $0x50] sm:$0xff]  ;;  %v156_v22 = vld [vmem:[#allocation2 + $0x48] sm:$0xff] }
   0xc   :  { %124 = vmatpush.msra.mxu0 %v82_v5  ;;  %v155_v23 = vld [vmem:[#allocation2 + $0x40] sm:$0xff]  ;;  %v154_v25 = vld [vmem:[#allocation2 + $0x38] sm:$0xff]  ;;  %v153_v28 = vld [vmem:[#allocation2 + $0x30] sm:$0xff] }
   0xd   :  { %1630 = vmatpush.msra.mxu2 %v82_v5  ;;  %169 = vmatpush.msra.mxu1 %v164_v10  ;;  %v152_v29 = vld [vmem:[#allocation2 + $0x28] sm:$0xff]  ;;  %v151_v34 = vld [vmem:[#allocation2 + $0x20] sm:$0xff]  ;;  %v1912_v10 = vld [vmem:[%s2195_s2 + $0x18] sm:$0xff] }
   0xe   :  { %125 = vmatpush.msra.mxu0 %v81_v7  ;;  %v32_v40 = vld [vmem:[%s2193_s0 + $0x8] sm:$0xff]  ;;  %v1879_v41 = vld [vmem:[#allocation2 + $0xa0] sm:$0xff] }
   0xf   :  { %60 = vperm.xlu0 %1639, %v37_v6   ;;  %1631 = vmatpush.msra.mxu2 %v81_v7  ;;  %v33_v7 = vld [vmem:[%s2193_s0 + $0x10] sm:$0xff]  ;;  %v1899_v8 = vld [vmem:[%s2195_s2 + $0x28] sm:$0xff]  ;;  %v1905_v9 = vld [vmem:[%s2195_s2 + $0x20] sm:$0xff] }
  0x10   :  { %170 = vmatpush.msra.mxu1 %v163_v11  ;;  %757 = vmatpush.bf16.msrb.mxu0 %v1845_v14  ;;  %v1920_v11 = vld [vmem:[%s2195_s2 + $0x10] sm:$0xff] }
  0x11   :  { %244 = vmatpush.bf16.msrb.mxu2 %v1845_v14  ;;  %45 = vperm.xlu2 %1641, %v32_v40  }
  0x12   :  { %171 = vmatpush.msra.mxu1 %v162_v12  ;;  %327 = vmatpush.bf16.msra.mxu3 %v1899_v8 }
  0x14   :  { %172 = vmatpush.msra.mxu1 %v161_v13  ;;  %758 = vmatpush.bf16.msrb.mxu0 %v1851_v16 }
  0x15   :  { %245 = vmatpush.bf16.msrb.mxu2 %v1851_v16 }
  0x16   :  { %173 = vmatpush.msra.mxu1 %v160_v15  ;;  %328 = vmatpush.bf16.msra.mxu3 %v1905_v9 }
  0x18   :  { %174 = vmatpush.msra.mxu1 %v159_v17 }
  0x1a   :  { %175 = vmatpush.msra.mxu1 %v158_v19  ;;  %329 = vmatpush.bf16.msra.mxu3 %v1912_v10 }
  0x1c   :  { %176 = vmatpush.msra.mxu1 %v157_v20 }
  0x1e   :  { %177 = vmatpush.msra.mxu1 %v156_v22  ;;  %330 = vmatpush.bf16.msra.mxu3 %v1920_v11 }
  0x20   :  { %178 = vmatpush.msra.mxu1 %v155_v23 }
  0x22   :  { %179 = vmatpush.msra.mxu1 %v154_v25  ;;  %450 = vmatpush.bf16.msrb.mxu3 %v1899_v8 }
  0x24   :  { %180 = vmatpush.msra.mxu1 %v153_v28 }
  0x26   :  { %181 = vmatpush.msra.mxu1 %v152_v29  ;;  %451 = vmatpush.bf16.msrb.mxu3 %v1905_v9  ;;  %v1942_v29 = vld [vmem:[#allocation2 + $0xa8] sm:$0xff] }
  0x28   :  { %182 = vmatpush.msra.mxu1 %v151_v34 }
  0x2a   :  { %452 = vmatpush.bf16.msrb.mxu3 %v1912_v10 }
  0x2e   :  { %453 = vmatpush.bf16.msrb.mxu3 %v1920_v11 }
  0x6b   :  { %v46_v49 = vpop.permute.xlu2 %45 }
  0x6c   :  { %vm66_vm4 = vcmp.eq.s32.totalorder %v46_v49, %v1856_v21 }
  0x6d   :  { %v74_v50 = vsel %vm66_vm4, 1.0, %v1804_v26 }
  0x79   :  { %v43_v24 = vpop.permute.xlu0 %42 }
  0x7a   :  { %vm65_vm1 = vcmp.eq.s32.totalorder %v43_v24, %v1856_v21  ;;  %v64_v32 = vpop.permute.xlu1 %63 }
  0x7b   :  { %v73_v27 = vsel %vm65_vm1, 1.0, %v1804_v26  ;;  %vm72_vm3 = vcmp.eq.s32.totalorder %v64_v32, %v1856_v21 }
  0x7c   :  { %1551 = vmatmul.msk.f32.vlgmr.msra.gmra.mxu0 %vm85_vm0, %v73_v27  ;;  %v80_v33 = vsel %vm72_vm3, 1.0, %v1804_v26 }
  0x7d   :  { %942 = vmatpush.bf16.msra.mxu0 %v1899_v8 }
  0x81   :  { %v61_v30 = vpop.permute.xlu0 %60  ;;  %943 = vmatpush.bf16.msra.mxu0 %v1905_v9 }
  0x82   :  { %vm71_vm2 = vcmp.eq.s32.totalorder %v61_v30, %v1856_v21 }
  0x83   :  { %v79_v31 = vsel %vm71_vm2, 1.0, %v1804_v26 }
  0x84   :  { %1557 = vmatmul.msk.f32.vlgmr.msra.gmra.mxu2 %vm85_vm0, %v79_v31  ;;  %1552 = vmatmul.msk.f32.gmra.mxu0 %vm85_vm0, %v74_v50 }
  0x85   :  { %388 = vmatpush.bf16.msra.mxu2 %v1845_v14  ;;  %944 = vmatpush.bf16.msra.mxu0 %v1912_v10 }
  0x89   :  { %389 = vmatpush.bf16.msra.mxu2 %v1851_v16  ;;  %945 = vmatpush.bf16.msra.mxu0 %v1920_v11 }
  0x8c   :  { %1558 = vmatmul.msk.f32.gmra.mxu2 %vm85_vm0, %v80_v33 }
  0x94   :  { %246 = vmatmul.bf16.vlgmr.msrb.gmra.mxu2 %v1803_v0 }
  0x95   :  { %511 = vmatpush.bf16.msrb.mxu2 %v1845_v14 }
  0x99   :  { %512 = vmatpush.bf16.msrb.mxu2 %v1851_v16 }
  0xf9   :  { %v127_v35 = vpop.f32.mrf.mxu0 }
  0xfa   :  { %183 = vmatmul.f32.vlgmr.msra.gmra.mxu1 %v127_v35 }
 0x101   :  { %v130_v2 = vpop.f32.mrf.mxu0 }
 0x102   :  { %186 = vmatmul.f32.gmra.mxu1 %v130_v2 }
 0x107   :  { %v1872_v36 = vpop.f32.mrf.mxu2 }
 0x10f   :  { %v1874_v37 = vpop.f32.mrf.mxu2 }
 0x117   :  { %v247_v38 = vpop.f32.mrf.mxu2 }
 0x11f   :  { %v249_v39 = vpop.f32.mrf.mxu2 }
 0x177   :  { %v184_v42 = vpop.f32.mrf.mxu1 }
 0x178   :  { %v222_v43 = vadd.f32 %v1879_v41, %v184_v42 }
 0x17a   :  { %v251_v44 = vadd.f32 %v247_v38, %v222_v43 }
 0x17c   :  { %1642 = vtanh.f32 %v251_v44  ;;  %v1567_v46 = vmul.f32 -1.442695, %v251_v44 }
 0x17e   :  { %1644 = vpow2.f32 %v1567_v46 }
 0x17f   :  { %v187_v20 = vpop.f32.mrf.mxu1 }
 0x180   :  { %v374_v22 = vadd.f32 %v1879_v41, %v187_v20 }
 0x182   :  { %v1643_v45 = vpop.eup %1642 }
 0x183   :  { %274 = vrot.lane.b32.xlu1 %v1643_v45, %s1805_s30 }
 0x184   :  { %v1645_v47 = vpop.eup %1644 }
 0x185   :  { %v255_v48 = vadd.f32 1.0, %v1645_v47 }
 0x187   :  { %1646 = vrcp.f32 %v255_v48  ;;  %v267_v56 = vand.u32 2147483648, %v255_v48  ;;  %vm261_vm6 = vweird.f32 %v255_v48  ;;  %v265_v57 = vand.u32 2147483647, %v255_v48 }
 0x189   :  { %v268_v59 = vor.u32 1.1754944e-38, %v267_v56  ;;  %vm266_vm8 = vcmp.eq.f32.partialorder %v265_v57, 8.507059e+37 }
 0x18d   :  { %v1647_v51 = vpop.eup %1646 }
 0x18e   :  { %v257_v52 = vmul.f32 %v1647_v51, %v255_v48  ;;  %vm262_vm5 = vweird.f32 %v1647_v51 }
 0x18f   :  { %vm263_vm7 = vmor %vm261_vm6, %vm262_vm5 }
 0x190   :  { %v258_v53 = vsub.f32 1.0, %v257_v52 }
 0x192   :  { %v259_v54 = vmul.f32 %v1647_v51, %v258_v53 }
 0x194   :  { %v260_v55 = vadd.f32 %v1647_v51, %v259_v54 }
 0x196   :  { %v264_v58 = vsel %vm263_vm7, %v1647_v51, %v260_v55 }
 0x197   :  { %v269_v61 = vsel %vm266_vm8, %v268_v59, %v264_v58 }
 0x198   :  { %v272_v63 = vmul.f32 0.0, %v269_v61 }
 0x1f5   :  { %v275_v60 = vpop.permute.xlu1 %274 }
 0x1f6   :  { %v277_v62 = vmul.f32 %v275_v60, %v269_v61 }
 0x1f8   :  { %279 = vrot.lane.b32.xlu2 %v277_v62, %s1806_s4 }
 0x252   :  { %v280_v0 = vpop.permute.xlu2 %279 }
 0x253   :  { %v1887_v1 = vadd.f32 %v280_v0, %v272_v63 }
 0x255   :  { %1648 = vtanh.f32 %v1887_v1 }
 0x25b   :  { %v1649_v3 = vpop.eup %1648 }
 0x25c   :  { %285 = vrot.lane.b32.xlu0 %v1649_v3, %s1805_s30 }
 0x2ce   :  { %v286_v4 = vpop.permute.xlu0 %285 }
 0x2cf   :  { %v288_v5 = vmul.f32 %v286_v4, %v269_v61 }
 0x2d1   :  { %v375_v6 = vpack.c.bf16 %v288_v5, %v288_v5  ;;  %290 = vrot.lane.b32.xlu1 %v288_v5, %s1806_s4 }
 0x2d3   :  { %377 = vrot.lane.b32.xlu2 %v375_v6, %s1806_s4 }
 0x2db   :  { %48 = vperm.xlu2 %1641, %v33_v7  }
 0x32d   :  { %v378_v12 = vpop.permute.xlu2 %377 }
 0x32e   :  { %1586 = vmatmul.msk.bf16.vlgmr.msra.gmra.mxu2 %vm85_vm0, %v378_v12 }
 0x32f   :  { %634 = vmatpush.bf16.msra.mxu2 %v1845_v14 }
 0x333   :  { %635 = vmatpush.bf16.msra.mxu2 %v1851_v16 }
 0x335   :  { %v49_v13 = vpop.permute.xlu2 %48 }
 0x336   :  { %vm67_vm9 = vcmp.eq.s32.totalorder %v49_v13, %v1856_v21 }
 0x337   :  { %v75_v15 = vsel %vm67_vm9, 1.0, %v1804_v26 }
 0x338   :  { %1553 = vmatmul.msk.f32.gmra.mxu0 %vm85_vm0, %v75_v15 }
 0x343   :  { %v291_v17 = vpop.permute.xlu1 %290 }
 0x344   :  { %v293_v18 = vsel %vm85_vm0, %v291_v17, 0.0 }
 0x345   :  { %v294_v19 = vpack.c.bf16 %v293_v18, %v293_v18 }
 0x347   :  { %1584 = vmatmul.msk.bf16.vlgmr.msra.gmra.mxu3 %vm319_vm10, %v294_v19 }
 0x348   :  { %573 = vmatpush.bf16.msra.mxu3 %v1899_v8 }
 0x34c   :  { %574 = vmatpush.bf16.msra.mxu3 %v1905_v9 }
 0x350   :  { %575 = vmatpush.bf16.msra.mxu3 %v1912_v10 }
 0x354   :  { %576 = vmatpush.bf16.msra.mxu3 %v1920_v11 }
 0x3b1   :  { %v391_v23 = vpop.f32.mrf.mxu2 }
 0x3b2   :  { %v395_v24 = vadd.f32 %v391_v23, %v374_v22  ;;  %v34_v23 = vld [vmem:[%s2193_s0 + $0x18] sm:$0xff] }
 0x3b4   :  { %1650 = vtanh.f32 %v395_v24  ;;  %v1587_v34 = vmul.f32 -1.442695, %v395_v24 }
 0x3b5   :  { %v133_v25 = vpop.f32.mrf.mxu0 }
 0x3b6   :  { %189 = vmatmul.f32.gmra.mxu1 %v133_v25 }
 0x3b9   :  { %v393_v27 = vpop.f32.mrf.mxu2 }
 0x3ba   :  { %v1651_v28 = vpop.eup %1650 }
 0x3bb   :  { %418 = vrot.lane.b32.xlu1 %v1651_v28, %s1805_s30 }
 0x3ca   :  { %v332_v30 = vpop.f32.mrf.mxu3 }
 0x3cb   :  { %v336_v31 = vadd.f32 %v332_v30, %v1942_v29 }
 0x3cd   :  { %1652 = vtanh.f32 %v336_v31  ;;  %v1585_v40 = vmul.f32 -1.442695, %v336_v31 }
 0x3ce   :  { %1654 = vpow2.f32 %v1587_v34 }
 0x3d2   :  { %v334_v32 = vpop.f32.mrf.mxu3 }
 0x3d3   :  { %v1653_v33 = vpop.eup %1652 }
 0x3d4   :  { %359 = vrot.lane.b32.xlu0 %v1653_v33, %s1805_s30  ;;  %v1655_v35 = vpop.eup %1654 }
 0x3d5   :  { %v399_v38 = vadd.f32 1.0, %v1655_v35 }
 0x3d7   :  { %1656 = vrcp.f32 %v399_v38  ;;  %v411_v48 = vand.u32 2147483648, %v399_v38  ;;  %vm405_vm12 = vweird.f32 %v399_v38  ;;  %v409_v49 = vand.u32 2147483647, %v399_v38 }
 0x3d8   :  { %1658 = vpow2.f32 %v1585_v40 }
 0x3d9   :  { %v412_v51 = vor.u32 1.1754944e-38, %v411_v48  ;;  %vm410_vm14 = vcmp.eq.f32.partialorder %v409_v49, 8.507059e+37 }
 0x3dd   :  { %v1657_v39 = vpop.eup %1656 }
 0x3de   :  { %v401_v42 = vmul.f32 %v1657_v39, %v399_v38  ;;  %v1659_v45 = vpop.eup %1658  ;;  %vm406_vm11 = vweird.f32 %v1657_v39 }
 0x3df   :  { %v340_v46 = vadd.f32 1.0, %v1659_v45  ;;  %vm407_vm13 = vmor %vm405_vm12, %vm406_vm11 }
 0x3e0   :  { %v402_v43 = vsub.f32 1.0, %v401_v42 }
 0x3e1   :  { %1660 = vrcp.f32 %v340_v46  ;;  %v352_v60 = vand.u32 2147483648, %v340_v46  ;;  %vm346_vm1 = vweird.f32 %v340_v46  ;;  %v350_v61 = vand.u32 2147483647, %v340_v46 }
 0x3e2   :  { %v403_v44 = vmul.f32 %v1657_v39, %v402_v43 }
 0x3e3   :  { %v353_v63 = vor.u32 1.1754944e-38, %v352_v60  ;;  %vm351_vm3 = vcmp.eq.f32.partialorder %v350_v61, 8.507059e+37 }
 0x3e4   :  { %v404_v47 = vadd.f32 %v1657_v39, %v403_v44 }
 0x3e6   :  { %v408_v50 = vsel %vm407_vm13, %v1657_v39, %v404_v47 }
 0x3e7   :  { %v413_v53 = vsel %vm410_vm14, %v412_v51, %v408_v50  ;;  %v1661_v55 = vpop.eup %1660 }
 0x3e8   :  { %v342_v56 = vmul.f32 %v1661_v55, %v340_v46  ;;  %vm347_vm15 = vweird.f32 %v1661_v55  ;;  %v416_v4 = vmul.f32 %v413_v53, %v1887_v1 }
 0x3e9   :  { %vm348_vm2 = vmor %vm346_vm1, %vm347_vm15 }
 0x3ea   :  { %v343_v57 = vsub.f32 1.0, %v342_v56 }
 0x3ec   :  { %v344_v58 = vmul.f32 %v1661_v55, %v343_v57 }
 0x3ee   :  { %v345_v59 = vadd.f32 %v1661_v55, %v344_v58 }
 0x3f0   :  { %v349_v62 = vsel %vm348_vm2, %v1661_v55, %v345_v59 }
 0x3f1   :  { %v354_v2 = vsel %vm351_vm3, %v353_v63, %v349_v62 }
 0x3f2   :  { %v357_v12 = vmul.f32 0.0, %v354_v2 }
 0x42d   :  { %v419_v52 = vpop.permute.xlu1 %418 }
 0x42e   :  { %v421_v54 = vmul.f32 %v419_v52, %v413_v53 }
 0x430   :  { %423 = vrot.lane.b32.xlu1 %v421_v54, %s1806_s4 }
 0x433   :  { %v190_v33 = vpop.f32.mrf.mxu1 }
 0x434   :  { %v497_v34 = vadd.f32 %v1879_v41, %v190_v33 }
 0x446   :  { %v360_v0 = vpop.permute.xlu0 %359 }
 0x447   :  { %v362_v3 = vmul.f32 %v360_v0, %v354_v2 }
 0x449   :  { %364 = vrot.lane.b32.xlu0 %v362_v3, %s1806_s4 }
 0x4a2   :  { %v424_v5 = vpop.permute.xlu1 %423 }
 0x4a3   :  { %v1949_v6 = vadd.f32 %v424_v5, %v416_v4 }
 0x4a5   :  { %1662 = vtanh.f32 %v1949_v6 }
 0x4ab   :  { %v1663_v7 = vpop.eup %1662 }
 0x4ac   :  { %429 = vrot.lane.b32.xlu0 %v1663_v7, %s1805_s30 }
 0x4bb   :  { %v365_v13 = vpop.permute.xlu0 %364 }
 0x4bc   :  { %v1953_v15 = vadd.f32 %v365_v13, %v357_v12 }
 0x4be   :  { %1664 = vtanh.f32 %v1953_v15 }
 0x4c4   :  { %v1665_v17 = vpop.eup %1664 }
 0x4c5   :  { %370 = vrot.lane.b32.xlu2 %v1665_v17, %s1805_s30 }
 0x51e   :  { %v430_v18 = vpop.permute.xlu0 %429 }
 0x51f   :  { %v432_v19 = vmul.f32 %v430_v18, %v413_v53  ;;  %v371_v1 = vpop.permute.xlu2 %370 }
 0x520   :  { %v1957_v20 = vmul.f32 %v371_v1, %v354_v2 }
 0x521   :  { %v498_v22 = vpack.c.bf16 %v432_v19, %v432_v19  ;;  %434 = vrot.lane.b32.xlu1 %v432_v19, %s1806_s4 }
 0x522   :  { %438 = vrot.lane.b32.xlu2 %v1957_v20, %s1805_s30 }
 0x523   :  { %500 = vrot.lane.b32.xlu0 %v498_v22, %s1806_s4 }
 0x52b   :  { %51 = vperm.xlu0 %1639, %v34_v23  }
 0x57c   :  { %v439_v24 = vpop.permute.xlu2 %438 }
 0x593   :  { %v435_v25 = vpop.permute.xlu1 %434 }
 0x594   :  { %v441_v27 = vsel %vm85_vm0, %v435_v25, %v439_v24 }
 0x595   :  { %v442_v28 = vpack.c.bf16 %v441_v27, %v441_v27  ;;  %v501_v30 = vpop.permute.xlu0 %500 }
 0x596   :  { %1590 = vmatmul.msk.bf16.vlgmr.msrb.gmra.mxu2 %vm85_vm0, %v501_v30 }
 0x597   :  { %1588 = vmatmul.msk.bf16.vlgmr.msrb.gmra.mxu3 %vm319_vm10, %v442_v28  ;;  %819 = vmatpush.bf16.msrb.mxu2 %v1899_v8 }
 0x598   :  { %696 = vmatpush.bf16.msrb.mxu3 %v1899_v8 }
 0x59b   :  { %820 = vmatpush.bf16.msrb.mxu2 %v1905_v9 }
 0x59c   :  { %697 = vmatpush.bf16.msrb.mxu3 %v1905_v9 }
 0x59d   :  { %v52_v31 = vpop.permute.xlu0 %51 }
 0x59e   :  { %vm68_vm4 = vcmp.eq.s32.totalorder %v52_v31, %v1856_v21 }
 0x59f   :  { %v76_v32 = vsel %vm68_vm4, 1.0, %v1804_v26  ;;  %821 = vmatpush.bf16.msrb.mxu2 %v1912_v10 }
 0x5a0   :  { %1554 = vmatmul.msk.f32.gmra.mxu0 %vm85_vm0, %v76_v32  ;;  %698 = vmatpush.bf16.msrb.mxu3 %v1912_v10 }
 0x5a3   :  { %822 = vmatpush.bf16.msrb.mxu2 %v1920_v11 }
 0x5a4   :  { %699 = vmatpush.bf16.msrb.mxu3 %v1920_v11 }
 0x619   :  { %v514_v35 = vpop.f32.mrf.mxu2 }
 0x61a   :  { %v518_v38 = vadd.f32 %v514_v35, %v497_v34  ;;  %v455_v39 = vpop.f32.mrf.mxu3  ;;  %v35_v35 = vld [vmem:[%s2193_s0 + $0x20] sm:$0xff] }
 0x61b   :  { %v459_v40 = vadd.f32 %v455_v39, %v1942_v29 }
 0x61c   :  { %1666 = vtanh.f32 %v518_v38  ;;  %v1591_v47 = vmul.f32 -1.442695, %v518_v38 }
 0x61d   :  { %1668 = vtanh.f32 %v459_v40  ;;  %v136_v42 = vpop.f32.mrf.mxu0  ;;  %v1589_v51 = vmul.f32 -1.442695, %v459_v40 }
 0x61e   :  { %192 = vmatmul.f32.gmra.mxu1 %v136_v42  ;;  %1670 = vpow2.f32 %v1591_v47 }
 0x621   :  { %v516_v43 = vpop.f32.mrf.mxu2 }
 0x622   :  { %v1667_v44 = vpop.eup %1666  ;;  %v457_v45 = vpop.f32.mrf.mxu3 }
 0x623   :  { %v1669_v46 = vpop.eup %1668  ;;  %541 = vrot.lane.b32.xlu2 %v1667_v44, %s1805_s30 }
 0x624   :  { %482 = vrot.lane.b32.xlu1 %v1669_v46, %s1805_s30  ;;  %v1671_v48 = vpop.eup %1670 }
 0x625   :  { %v522_v49 = vadd.f32 1.0, %v1671_v48 }
 0x627   :  { %1672 = vrcp.f32 %v522_v49  ;;  %v534_v58 = vand.u32 2147483648, %v522_v49  ;;  %vm528_vm6 = vweird.f32 %v522_v49  ;;  %v532_v59 = vand.u32 2147483647, %v522_v49 }
 0x628   :  { %1674 = vpow2.f32 %v1589_v51 }
 0x629   :  { %v535_v61 = vor.u32 1.1754944e-38, %v534_v58  ;;  %vm533_vm8 = vcmp.eq.f32.partialorder %v532_v59, 8.507059e+37 }
 0x62d   :  { %v1673_v50 = vpop.eup %1672 }
 0x62e   :  { %v524_v52 = vmul.f32 %v1673_v50, %v522_v49  ;;  %v1675_v55 = vpop.eup %1674  ;;  %vm529_vm5 = vweird.f32 %v1673_v50 }
 0x62f   :  { %v463_v56 = vadd.f32 1.0, %v1675_v55  ;;  %vm530_vm7 = vmor %vm528_vm6, %vm529_vm5 }
 0x630   :  { %v525_v53 = vsub.f32 1.0, %v524_v52 }
 0x631   :  { %1676 = vrcp.f32 %v463_v56  ;;  %v475_v12 = vand.u32 2147483648, %v463_v56  ;;  %vm469_vm11 = vweird.f32 %v463_v56  ;;  %v473_v13 = vand.u32 2147483647, %v463_v56 }
 0x632   :  { %v526_v54 = vmul.f32 %v1673_v50, %v525_v53 }
 0x633   :  { %v476_v18 = vor.u32 1.1754944e-38, %v475_v12  ;;  %vm474_vm13 = vcmp.eq.f32.partialorder %v473_v13, 8.507059e+37 }
 0x634   :  { %v527_v57 = vadd.f32 %v1673_v50, %v526_v54 }
 0x636   :  { %v531_v60 = vsel %vm530_vm7, %v1673_v50, %v527_v57 }
 0x637   :  { %v536_v63 = vsel %vm533_vm8, %v535_v61, %v531_v60  ;;  %v1677_v2 = vpop.eup %1676 }
 0x638   :  { %v465_v3 = vmul.f32 %v1677_v2, %v463_v56  ;;  %vm470_vm9 = vweird.f32 %v1677_v2  ;;  %v539_v23 = vmul.f32 %v536_v63, %v1949_v6 }
 0x639   :  { %vm471_vm12 = vmor %vm469_vm11, %vm470_vm9 }
 0x63a   :  { %v466_v4 = vsub.f32 1.0, %v465_v3 }
 0x63c   :  { %v467_v5 = vmul.f32 %v1677_v2, %v466_v4 }
 0x63e   :  { %v468_v7 = vadd.f32 %v1677_v2, %v467_v5 }
 0x640   :  { %v472_v17 = vsel %vm471_vm12, %v1677_v2, %v468_v7 }
 0x641   :  { %v477_v1 = vsel %vm474_vm13, %v476_v18, %v472_v17 }
 0x642   :  { %v480_v28 = vmul.f32 %v477_v1, %v1953_v15 }
 0x67d   :  { %v542_v62 = vpop.permute.xlu2 %541 }
 0x67e   :  { %v544_v0 = vmul.f32 %v542_v62, %v536_v63 }
 0x680   :  { %546 = vrot.lane.b32.xlu2 %v544_v0, %s1806_s4 }
 0x696   :  { %v483_v19 = vpop.permute.xlu1 %482 }
 0x697   :  { %v485_v22 = vmul.f32 %v483_v19, %v477_v1 }
 0x699   :  { %487 = vrot.lane.b32.xlu1 %v485_v22, %s1806_s4  ;;  %v36_v22 = vld [vmem:[%s2193_s0 + $0x28] sm:$0xff] }
 0x69b   :  { %v193_v47 = vpop.f32.mrf.mxu1 }
 0x69c   :  { %v620_v48 = vadd.f32 %v1879_v41, %v193_v47 }
 0x6da   :  { %v547_v24 = vpop.permute.xlu2 %546 }
 0x6db   :  { %v1987_v25 = vadd.f32 %v547_v24, %v539_v23 }
 0x6dd   :  { %1678 = vtanh.f32 %v1987_v25 }
 0x6e3   :  { %v1679_v27 = vpop.eup %1678 }
 0x6e4   :  { %552 = vrot.lane.b32.xlu1 %v1679_v27, %s1805_s30 }
 0x70b   :  { %v488_v30 = vpop.permute.xlu1 %487 }
 0x70c   :  { %v1992_v31 = vadd.f32 %v488_v30, %v480_v28 }
 0x70e   :  { %1680 = vtanh.f32 %v1992_v31 }
 0x714   :  { %v1681_v32 = vpop.eup %1680 }
 0x715   :  { %493 = vrot.lane.b32.xlu0 %v1681_v32, %s1805_s30 }
 0x756   :  { %v553_v33 = vpop.permute.xlu1 %552 }
 0x757   :  { %v555_v6 = vmul.f32 %v553_v33, %v536_v63 }
 0x759   :  { %v621_v34 = vpack.c.bf16 %v555_v6, %v555_v6  ;;  %557 = vrot.lane.b32.xlu2 %v555_v6, %s1806_s4 }
 0x75b   :  { %623 = vrot.lane.b32.xlu1 %v621_v34, %s1806_s4 }
 0x763   :  { %54 = vperm.xlu1 %1640, %v35_v35  }
 0x787   :  { %v494_v15 = vpop.permute.xlu0 %493 }
 0x788   :  { %v2001_v38 = vmul.f32 %v494_v15, %v477_v1 }
 0x78a   :  { %561 = vrot.lane.b32.xlu0 %v2001_v38, %s1805_s30 }
 0x7b3   :  { %v558_v43 = vpop.permute.xlu2 %557 }
 0x7cd   :  { %v624_v39 = vpop.permute.xlu1 %623 }
 0x7ce   :  { %1594 = vmatmul.msk.bf16.vlgmr.msra.gmra.mxu2 %vm85_vm0, %v624_v39 }
 0x7cf   :  { %1003 = vmatpush.bf16.msra.mxu2 %v1845_v14 }
 0x7d3   :  { %1004 = vmatpush.bf16.msra.mxu2 %v1851_v16 }
 0x7d5   :  { %v55_v40 = vpop.permute.xlu1 %54 }
 0x7d6   :  { %vm69_vm14 = vcmp.eq.s32.totalorder %v55_v40, %v1856_v21 }
 0x7d7   :  { %v77_v42 = vsel %vm69_vm14, 1.0, %v1804_v26 }
 0x7d8   :  { %1555 = vmatmul.msk.f32.gmra.mxu0 %vm85_vm0, %v77_v42 }
 0x7fc   :  { %v562_v44 = vpop.permute.xlu0 %561 }
 0x7fd   :  { %v564_v45 = vsel %vm85_vm0, %v558_v43, %v562_v44 }
 0x7fe   :  { %v565_v46 = vpack.c.bf16 %v564_v45, %v564_v45 }
 0x800   :  { %1592 = vmatmul.msk.bf16.vlgmr.msra.gmra.mxu3 %vm319_vm10, %v565_v46 }
 0x801   :  { %880 = vmatpush.bf16.msra.mxu3 %v1845_v14 }
 0x805   :  { %881 = vmatpush.bf16.msra.mxu3 %v1851_v16 }
 0x851   :  { %v637_v49 = vpop.f32.mrf.mxu2 }
 0x852   :  { %v641_v50 = vadd.f32 %v637_v49, %v620_v48 }
 0x854   :  { %1682 = vtanh.f32 %v641_v50  ;;  %v1595_v16 = vmul.f32 -1.442695, %v641_v50 }
 0x855   :  { %v139_v51 = vpop.f32.mrf.mxu0 }
 0x856   :  { %195 = vmatmul.f32.gmra.mxu1 %v139_v51 }
 0x859   :  { %v639_v52 = vpop.f32.mrf.mxu2 }
 0x85a   :  { %v1683_v53 = vpop.eup %1682 }
 0x85b   :  { %664 = vrot.lane.b32.xlu0 %v1683_v53, %s1805_s30 }
 0x883   :  { %v578_v54 = vpop.f32.mrf.mxu3 }
 0x884   :  { %v582_v55 = vadd.f32 %v578_v54, %v1942_v29 }
 0x886   :  { %1684 = vtanh.f32 %v582_v55  ;;  %v1593_v60 = vmul.f32 -1.442695, %v582_v55 }
 0x887   :  { %1686 = vpow2.f32 %v1595_v16 }
 0x88b   :  { %v580_v56 = vpop.f32.mrf.mxu3 }
 0x88c   :  { %v1685_v14 = vpop.eup %1684 }
 0x88d   :  { %605 = vrot.lane.b32.xlu2 %v1685_v14, %s1805_s30  ;;  %v1687_v57 = vpop.eup %1686 }
 0x88e   :  { %v645_v58 = vadd.f32 1.0, %v1687_v57 }
 0x890   :  { %1688 = vrcp.f32 %v645_v58  ;;  %v657_v4 = vand.u32 2147483648, %v645_v58  ;;  %vm651_vm1 = vweird.f32 %v645_v58  ;;  %v655_v5 = vand.u32 2147483647, %v645_v58 }
 0x891   :  { %1690 = vpow2.f32 %v1593_v60 }
 0x892   :  { %v658_v12 = vor.u32 1.1754944e-38, %v657_v4  ;;  %vm656_vm3 = vcmp.eq.f32.partialorder %v655_v5, 8.507059e+37 }
 0x896   :  { %v1689_v59 = vpop.eup %1688 }
 0x897   :  { %v647_v61 = vmul.f32 %v1689_v59, %v645_v58  ;;  %v1691_v0 = vpop.eup %1690  ;;  %vm652_vm15 = vweird.f32 %v1689_v59 }
 0x898   :  { %v586_v3 = vadd.f32 1.0, %v1691_v0  ;;  %vm653_vm2 = vmor %vm651_vm1, %vm652_vm15 }
 0x899   :  { %v648_v62 = vsub.f32 1.0, %v647_v61 }
 0x89a   :  { %1692 = vrcp.f32 %v586_v3  ;;  %v598_v28 = vand.u32 2147483648, %v586_v3  ;;  %vm592_vm5 = vweird.f32 %v586_v3  ;;  %v596_v30 = vand.u32 2147483647, %v586_v3 }
 0x89b   :  { %v649_v63 = vmul.f32 %v1689_v59, %v648_v62 }
 0x89c   :  { %v599_v33 = vor.u32 1.1754944e-38, %v598_v28  ;;  %vm597_vm7 = vcmp.eq.f32.partialorder %v596_v30, 8.507059e+37 }
 0x89d   :  { %v650_v2 = vadd.f32 %v1689_v59, %v649_v63 }
 0x89f   :  { %v654_v7 = vsel %vm653_vm2, %v1689_v59, %v650_v2 }
 0x8a0   :  { %v659_v17 = vsel %vm656_vm3, %v658_v12, %v654_v7  ;;  %v1693_v19 = vpop.eup %1692 }
 0x8a1   :  { %v588_v1 = vmul.f32 %v1693_v19, %v586_v3  ;;  %vm593_vm4 = vweird.f32 %v1693_v19  ;;  %v662_v15 = vmul.f32 %v659_v17, %v1987_v25 }
 0x8a2   :  { %vm594_vm6 = vmor %vm592_vm5, %vm593_vm4 }
 0x8a3   :  { %v589_v23 = vsub.f32 1.0, %v588_v1 }
 0x8a5   :  { %v590_v24 = vmul.f32 %v1693_v19, %v589_v23 }
 0x8a7   :  { %v591_v27 = vadd.f32 %v1693_v19, %v590_v24 }
 0x8a9   :  { %v595_v32 = vsel %vm594_vm6, %v1693_v19, %v591_v27 }
 0x8aa   :  { %v600_v34 = vsel %vm597_vm7, %v599_v33, %v595_v32 }
 0x8ab   :  { %v603_v42 = vmul.f32 %v600_v34, %v1992_v31 }
 0x8cd   :  { %v665_v13 = vpop.permute.xlu0 %664 }
 0x8ce   :  { %v667_v18 = vmul.f32 %v665_v13, %v659_v17 }
 0x8d0   :  { %669 = vrot.lane.b32.xlu0 %v667_v18, %s1806_s4 }
 0x8d8   :  { %57 = vperm.xlu0 %1639, %v36_v22  }
 0x8e7   :  { %v606_v6 = vpop.permute.xlu2 %605 }
 0x8e8   :  { %v608_v35 = vmul.f32 %v606_v6, %v600_v34 }
 0x8ea   :  { %610 = vrot.lane.b32.xlu2 %v608_v35, %s1806_s4 }
 0x942   :  { %v670_v39 = vpop.permute.xlu0 %669 }
 0x943   :  { %v2025_v40 = vadd.f32 %v670_v39, %v662_v15 }
 0x944   :  { %v611_v43 = vpop.permute.xlu2 %610 }
 0x945   :  { %1694 = vtanh.f32 %v2025_v40  ;;  %v2029_v44 = vadd.f32 %v611_v43, %v603_v42 }
 0x947   :  { %1696 = vtanh.f32 %v2029_v44 }
 0x94a   :  { %v58_v45 = vpop.permute.xlu0 %57 }
 0x94b   :  { %v1695_v46 = vpop.eup %1694  ;;  %vm70_vm8 = vcmp.eq.s32.totalorder %v58_v45, %v1856_v21 }
 0x94c   :  { %v78_v47 = vsel %vm70_vm8, 1.0, %v1804_v26  ;;  %675 = vrot.lane.b32.xlu2 %v1695_v46, %s1805_s30 }
 0x94d   :  { %v1697_v25 = vpop.eup %1696  ;;  %1556 = vmatmul.msk.f32.gmra.mxu0 %vm85_vm0, %v78_v47 }
 0x94e   :  { %616 = vrot.lane.b32.xlu1 %v1697_v25, %s1805_s30 }
 0x9a6   :  { %v676_v31 = vpop.permute.xlu2 %675 }
 0x9a7   :  { %v678_v48 = vmul.f32 %v676_v31, %v659_v17 }
 0x9a9   :  { %v744_v49 = vpack.c.bf16 %v678_v48, %v678_v48  ;;  %680 = vrot.lane.b32.xlu1 %v678_v48, %s1806_s4 }
 0x9ab   :  { %746 = vrot.lane.b32.xlu0 %v744_v49, %s1806_s4 }
 0x9c0   :  { %v617_v50 = vpop.permute.xlu1 %616 }
 0x9c1   :  { %v2039_v51 = vmul.f32 %v617_v50, %v600_v34 }
 0x9c3   :  { %684 = vrot.lane.b32.xlu2 %v2039_v51, %s1805_s30 }
 0x9ca   :  { %v142_v21 = vpop.f32.mrf.mxu0 }
 0x9cb   :  { %198 = vmatmul.f32.gmra.mxu1 %v142_v21 }
 0x9d3   :  { %201 = vmatmul.f32.gmra.mxu1 %v1872_v36  ;;  %v196_v36 = vpop.f32.mrf.mxu1 }
 0x9db   :  { %204 = vmatmul.f32.gmra.mxu1 %v1874_v37  ;;  %v743_v37 = vadd.f32 %v1879_v41, %v196_v36 }
 0xa1b   :  { %v681_v26 = vpop.permute.xlu1 %680 }
 0xa1d   :  { %v747_v52 = vpop.permute.xlu0 %746  ;;  %v685_v53 = vpop.permute.xlu2 %684 }
 0xa1e   :  { %v687_v54 = vsel %vm85_vm0, %v681_v26, %v685_v53  ;;  %1598 = vmatmul.msk.bf16.vlgmr.msrb.gmra.mxu0 %vm85_vm0, %v747_v52  ;;  %v1770_v26 = vld [vmem:[%s2195_s2 + $0x8] sm:$0xff]  ;;  %v1771_v52 = vld [vmem:[%s2195_s2] sm:$0xff] }
 0xa1f   :  { %v688_v55 = vpack.c.bf16 %v687_v54, %v687_v54  ;;  %1188 = vmatpush.bf16.msrb.mxu0 %v1899_v8 }
 0xa21   :  { %1596 = vmatmul.msk.bf16.vlgmr.msrb.gmra.mxu3 %vm319_vm10, %v688_v55 }
 0xa22   :  { %1065 = vmatpush.bf16.msrb.mxu3 %v1899_v8 }
 0xa23   :  { %1189 = vmatpush.bf16.msrb.mxu0 %v1905_v9 }
 0xa26   :  { %1066 = vmatpush.bf16.msrb.mxu3 %v1905_v9 }
 0xa27   :  { %1190 = vmatpush.bf16.msrb.mxu0 %v1912_v10 }
 0xa2a   :  { %1067 = vmatpush.bf16.msrb.mxu3 %v1912_v10 }
 0xa2b   :  { %1191 = vmatpush.bf16.msrb.mxu0 %v1920_v11 }
 0xa2e   :  { %1068 = vmatpush.bf16.msrb.mxu3 %v1920_v11 }
 0xa9b   :  { %v760_v56 = vpop.f32.mrf.mxu0 }
 0xa9c   :  { %v764_v14 = vadd.f32 %v760_v56, %v743_v37  ;;  %v199_v37 = vpop.f32.mrf.mxu1 }
 0xa9d   :  { %v866_v56 = vadd.f32 %v1879_v41, %v199_v37  ;;  %v2112_v37 = vld [vmem:[#allocation2 + $0xa0] sm:$0xff] }
 0xa9e   :  { %1698 = vtanh.f32 %v764_v14  ;;  %v1599_v61 = vmul.f32 -1.442695, %v764_v14 }
 0xaa3   :  { %v762_v16 = vpop.f32.mrf.mxu0 }
 0xaa4   :  { %v1699_v8 = vpop.eup %1698  ;;  %v701_v57 = vpop.f32.mrf.mxu3 }
 0xaa5   :  { %v705_v58 = vadd.f32 %v701_v57, %v1942_v29  ;;  %787 = vrot.lane.b32.xlu1 %v1699_v8, %s1805_s30 }
 0xaa7   :  { %1700 = vtanh.f32 %v705_v58  ;;  %v1597_v59 = vmul.f32 -1.442695, %v705_v58 }
 0xaa9   :  { %1702 = vpow2.f32 %v1597_v59 }
 0xaac   :  { %v703_v9 = vpop.f32.mrf.mxu3 }
 0xaad   :  { %v1701_v10 = vpop.eup %1700 }
 0xaae   :  { %728 = vrot.lane.b32.xlu2 %v1701_v10, %s1805_s30 }
 0xaaf   :  { %v1703_v11 = vpop.eup %1702 }
 0xab0   :  { %v709_v60 = vadd.f32 1.0, %v1703_v11 }
 0xab2   :  { %1704 = vrcp.f32 %v709_v60  ;;  %v721_v12 = vand.u32 2147483648, %v709_v60  ;;  %vm715_vm11 = vweird.f32 %v709_v60  ;;  %v719_v13 = vand.u32 2147483647, %v709_v60 }
 0xab3   :  { %1706 = vpow2.f32 %v1599_v61 }
 0xab4   :  { %v722_v19 = vor.u32 1.1754944e-38, %v721_v12  ;;  %vm720_vm13 = vcmp.eq.f32.partialorder %v719_v13, 8.507059e+37 }
 0xab8   :  { %v1705_v62 = vpop.eup %1704 }
 0xab9   :  { %v1707_v63 = vpop.eup %1706  ;;  %v711_v0 = vmul.f32 %v1705_v62, %v709_v60  ;;  %vm716_vm9 = vweird.f32 %v1705_v62 }
 0xaba   :  { %v768_v2 = vadd.f32 1.0, %v1707_v63  ;;  %vm717_vm12 = vmor %vm715_vm11, %vm716_vm9 }
 0xabb   :  { %v712_v3 = vsub.f32 1.0, %v711_v0 }
 0xabc   :  { %1708 = vrcp.f32 %v768_v2  ;;  %v780_v30 = vand.u32 2147483648, %v768_v2  ;;  %vm774_vm15 = vweird.f32 %v768_v2  ;;  %v778_v32 = vand.u32 2147483647, %v768_v2 }
 0xabd   :  { %v713_v4 = vmul.f32 %v1705_v62, %v712_v3 }
 0xabe   :  { %v781_v6 = vor.u32 1.1754944e-38, %v780_v30  ;;  %vm779_vm2 = vcmp.eq.f32.partialorder %v778_v32, 8.507059e+37 }
 0xabf   :  { %v714_v7 = vadd.f32 %v1705_v62, %v713_v4 }
 0xac1   :  { %v718_v18 = vsel %vm717_vm12, %v1705_v62, %v714_v7 }
 0xac2   :  { %v1709_v5 = vpop.eup %1708  ;;  %v723_v22 = vsel %vm720_vm13, %v722_v19, %v718_v18 }
 0xac3   :  { %v770_v17 = vmul.f32 %v1709_v5, %v768_v2  ;;  %vm775_vm14 = vweird.f32 %v1709_v5  ;;  %v726_v39 = vmul.f32 %v723_v22, %v2029_v44 }
 0xac4   :  { %vm776_vm1 = vmor %vm774_vm15, %vm775_vm14 }
 0xac5   :  { %v771_v23 = vsub.f32 1.0, %v770_v17 }
 0xac7   :  { %v772_v27 = vmul.f32 %v1709_v5, %v771_v23 }
 0xac9   :  { %v773_v28 = vadd.f32 %v1709_v5, %v772_v27 }
 0xacb   :  { %v777_v33 = vsel %vm776_vm1, %v1709_v5, %v773_v28 }
 0xacc   :  { %v782_v35 = vsel %vm779_vm2, %v781_v6, %v777_v33 }
 0xacd   :  { %v785_v46 = vmul.f32 %v782_v35, %v2025_v40 }
 0xb08   :  { %v729_v1 = vpop.permute.xlu2 %728 }
 0xb09   :  { %v731_v24 = vmul.f32 %v729_v1, %v723_v22 }
 0xb0b   :  { %733 = vrot.lane.b32.xlu1 %v731_v24, %s1806_s4 }
 0xb17   :  { %v788_v34 = vpop.permute.xlu1 %787 }
 0xb18   :  { %v790_v15 = vmul.f32 %v788_v34, %v782_v35 }
 0xb1a   :  { %792 = vrot.lane.b32.xlu0 %v790_v15, %s1806_s4 }
 0xb7d   :  { %v734_v42 = vpop.permute.xlu1 %733 }
 0xb7e   :  { %v2063_v43 = vadd.f32 %v734_v42, %v726_v39 }
 0xb80   :  { %1710 = vtanh.f32 %v2063_v43 }
 0xb86   :  { %v1711_v45 = vpop.eup %1710 }
 0xb87   :  { %739 = vrot.lane.b32.xlu0 %v1711_v45, %s1805_s30 }
 0xb8c   :  { %v793_v47 = vpop.permute.xlu0 %792 }
 0xb8d   :  { %v2068_v25 = vadd.f32 %v793_v47, %v785_v46 }
 0xb8f   :  { %1712 = vtanh.f32 %v2068_v25 }
 0xb95   :  { %v1713_v31 = vpop.eup %1712 }
 0xb96   :  { %798 = vrot.lane.b32.xlu2 %v1713_v31, %s1805_s30 }
 0xbf0   :  { %v799_v48 = vpop.permute.xlu2 %798 }
 0xbf1   :  { %v801_v44 = vmul.f32 %v799_v48, %v782_v35 }
 0xbf3   :  { %v867_v49 = vpack.c.bf16 %v801_v44, %v801_v44  ;;  %803 = vrot.lane.b32.xlu2 %v801_v44, %s1806_s4 }
 0xbf5   :  { %869 = vrot.lane.b32.xlu1 %v867_v49, %s1806_s4 }
 0xbf9   :  { %v740_v50 = vpop.permute.xlu0 %739 }
 0xbfa   :  { %v2074_v21 = vmul.f32 %v740_v50, %v723_v22 }
 0xbfc   :  { %807 = vrot.lane.b32.xlu0 %v2074_v21, %s1805_s30 }
 0xc4d   :  { %v804_v53 = vpop.permute.xlu2 %803 }
 0xc67   :  { %v870_v40 = vpop.permute.xlu1 %869 }
 0xc68   :  { %1602 = vmatmul.msk.bf16.vlgmr.msra.gmra.mxu3 %vm85_vm0, %v870_v40 }
 0xc69   :  { %1126 = vmatpush.bf16.msra.mxu3 %v1770_v26 }
 0xc6d   :  { %1127 = vmatpush.bf16.msra.mxu3 %v1771_v52 }
 0xc6e   :  { %v808_v54 = vpop.permute.xlu0 %807 }
 0xc6f   :  { %v810_v55 = vsel %vm85_vm0, %v804_v53, %v808_v54 }
 0xc70   :  { %v811_v36 = vpack.c.bf16 %v810_v55, %v810_v55 }
 0xc72   :  { %1600 = vmatmul.msk.bf16.vlgmr.msrb.gmra.mxu2 %vm319_vm10, %v811_v36  ;;  %v202_v36 = vpop.f32.mrf.mxu1 }
 0xceb   :  { %v883_v14 = vpop.f32.mrf.mxu3 }
 0xcec   :  { %v887_v16 = vadd.f32 %v883_v14, %v866_v56  ;;  %v989_v56 = vadd.f32 %v2112_v37, %v202_v36 }
 0xcee   :  { %1714 = vtanh.f32 %v887_v16  ;;  %v1603_v41 = vmul.f32 -1.442695, %v887_v16 }
 0xcf3   :  { %v885_v8 = vpop.f32.mrf.mxu3 }
 0xcf4   :  { %v1715_v57 = vpop.eup %1714 }
 0xcf5   :  { %910 = vrot.lane.b32.xlu1 %v1715_v57, %s1805_s30  ;;  %v824_v58 = vpop.f32.mrf.mxu2 }
 0xcf6   :  { %v828_v9 = vadd.f32 %v824_v58, %v1942_v29 }
 0xcf8   :  { %1716 = vtanh.f32 %v828_v9  ;;  %v1601_v11 = vmul.f32 -1.442695, %v828_v9 }
 0xcfa   :  { %1718 = vpow2.f32 %v1601_v11 }
 0xcfd   :  { %v826_v10 = vpop.f32.mrf.mxu2 }
 0xcfe   :  { %v1717_v59 = vpop.eup %1716 }
 0xcff   :  { %851 = vrot.lane.b32.xlu2 %v1717_v59, %s1805_s30 }
 0xd00   :  { %v1719_v60 = vpop.eup %1718 }
 0xd01   :  { %v832_v61 = vadd.f32 1.0, %v1719_v60 }
 0xd03   :  { %1720 = vrcp.f32 %v832_v61  ;;  %v844_v12 = vand.u32 2147483648, %v832_v61  ;;  %vm838_vm4 = vweird.f32 %v832_v61  ;;  %v842_v13 = vand.u32 2147483647, %v832_v61 }
 0xd04   :  { %1722 = vpow2.f32 %v1603_v41 }
 0xd05   :  { %v845_v19 = vor.u32 1.1754944e-38, %v844_v12  ;;  %vm843_vm6 = vcmp.eq.f32.partialorder %v842_v13, 8.507059e+37 }
 0xd09   :  { %v1721_v62 = vpop.eup %1720 }
 0xd0a   :  { %v1723_v63 = vpop.eup %1722  ;;  %v834_v0 = vmul.f32 %v1721_v62, %v832_v61  ;;  %vm839_vm3 = vweird.f32 %v1721_v62 }
 0xd0b   :  { %v891_v2 = vadd.f32 1.0, %v1723_v63  ;;  %vm840_vm5 = vmor %vm838_vm4, %vm839_vm3 }
 0xd0c   :  { %v835_v3 = vsub.f32 1.0, %v834_v0 }
 0xd0d   :  { %1724 = vrcp.f32 %v891_v2  ;;  %v903_v30 = vand.u32 2147483648, %v891_v2  ;;  %vm897_vm8 = vweird.f32 %v891_v2  ;;  %v901_v32 = vand.u32 2147483647, %v891_v2 }
 0xd0e   :  { %v836_v4 = vmul.f32 %v1721_v62, %v835_v3 }
 0xd0f   :  { %v904_v6 = vor.u32 1.1754944e-38, %v903_v30  ;;  %vm902_vm11 = vcmp.eq.f32.partialorder %v901_v32, 8.507059e+37 }
 0xd10   :  { %v837_v7 = vadd.f32 %v1721_v62, %v836_v4 }
 0xd12   :  { %v841_v18 = vsel %vm840_vm5, %v1721_v62, %v837_v7 }
 0xd13   :  { %v1725_v5 = vpop.eup %1724  ;;  %v846_v23 = vsel %vm843_vm6, %v845_v19, %v841_v18 }
 0xd14   :  { %v893_v17 = vmul.f32 %v1725_v5, %v891_v2  ;;  %vm898_vm7 = vweird.f32 %v1725_v5  ;;  %v849_v39 = vmul.f32 %v846_v23, %v2063_v43 }
 0xd15   :  { %vm899_vm9 = vmor %vm897_vm8, %vm898_vm7 }
 0xd16   :  { %v894_v1 = vsub.f32 1.0, %v893_v17 }
 0xd18   :  { %v895_v27 = vmul.f32 %v1725_v5, %v894_v1 }
 0xd1a   :  { %v896_v28 = vadd.f32 %v1725_v5, %v895_v27 }
 0xd1c   :  { %v900_v33 = vsel %vm899_vm9, %v1725_v5, %v896_v28 }
 0xd1d   :  { %v905_v35 = vsel %vm902_vm11, %v904_v6, %v900_v33 }
 0xd1e   :  { %v908_v47 = vmul.f32 %v905_v35, %v2068_v25 }
 0xd59   :  { %v852_v22 = vpop.permute.xlu2 %851 }
 0xd5a   :  { %v854_v24 = vmul.f32 %v852_v22, %v846_v23 }
 0xd5c   :  { %856 = vrot.lane.b32.xlu1 %v854_v24, %s1806_s4 }
 0xd67   :  { %v911_v34 = vpop.permute.xlu1 %910 }
 0xd68   :  { %v913_v15 = vmul.f32 %v911_v34, %v905_v35 }
 0xd6a   :  { %915 = vrot.lane.b32.xlu0 %v913_v15, %s1806_s4 }
 0xdce   :  { %v857_v42 = vpop.permute.xlu1 %856 }
 0xdcf   :  { %v2094_v45 = vadd.f32 %v857_v42, %v849_v39 }
 0xdd1   :  { %1726 = vtanh.f32 %v2094_v45 }
 0xdd7   :  { %v1727_v46 = vpop.eup %1726 }
 0xdd8   :  { %862 = vrot.lane.b32.xlu0 %v1727_v46, %s1805_s30 }
 0xddc   :  { %v916_v31 = vpop.permute.xlu0 %915 }
 0xddd   :  { %v2099_v48 = vadd.f32 %v916_v31, %v908_v47 }
 0xddf   :  { %1728 = vtanh.f32 %v2099_v48 }
 0xde5   :  { %v1729_v44 = vpop.eup %1728 }
 0xde6   :  { %921 = vrot.lane.b32.xlu2 %v1729_v44, %s1805_s30 }
 0xe40   :  { %v922_v49 = vpop.permute.xlu2 %921 }
 0xe41   :  { %v924_v43 = vmul.f32 %v922_v49, %v905_v35 }
 0xe43   :  { %v990_v50 = vpack.c.bf16 %v924_v43, %v924_v43  ;;  %926 = vrot.lane.b32.xlu2 %v924_v43, %s1806_s4 }
 0xe45   :  { %992 = vrot.lane.b32.xlu1 %v990_v50, %s1806_s4 }
 0xe4a   :  { %v863_v40 = vpop.permute.xlu0 %862 }
 0xe4b   :  { %v2105_v26 = vmul.f32 %v863_v40, %v846_v23 }
 0xe4d   :  { %930 = vrot.lane.b32.xlu0 %v2105_v26, %s1805_s30 }
 0xe9d   :  { %v927_v52 = vpop.permute.xlu2 %926 }
 0xeb7   :  { %v993_v25 = vpop.permute.xlu1 %992 }
 0xeb8   :  { %1606 = vmatmul.msk.bf16.vlgmr.msra.gmra.mxu2 %vm85_vm0, %v993_v25 }
 0xebf   :  { %v931_v53 = vpop.permute.xlu0 %930 }
 0xec0   :  { %v933_v54 = vsel %vm85_vm0, %v927_v52, %v931_v53 }
 0xec1   :  { %v934_v55 = vpack.c.bf16 %v933_v54, %v933_v54 }
 0xec3   :  { %1604 = vmatmul.msk.bf16.vlgmr.msra.gmra.mxu0 %vm319_vm10, %v934_v55 }
 0xf3b   :  { %v1006_v14 = vpop.f32.mrf.mxu2 }
 0xf3c   :  { %v1010_v16 = vadd.f32 %v1006_v14, %v989_v56  ;;  %v2139_v56 = vld [vmem:[#allocation2 + $0xa8] sm:$0xff] }
 0xf3e   :  { %1730 = vtanh.f32 %v1010_v16  ;;  %v1607_v11 = vmul.f32 -1.442695, %v1010_v16 }
 0xf40   :  { %v947_v8 = vpop.f32.mrf.mxu0 }
 0xf41   :  { %v951_v57 = vadd.f32 %v947_v8, %v1942_v29 }
 0xf43   :  { %1732 = vtanh.f32 %v951_v57  ;;  %v1008_v58 = vpop.f32.mrf.mxu2  ;;  %v1605_v63 = vmul.f32 -1.442695, %v951_v57  ;;  %v205_v57 = vpop.f32.mrf.mxu1 }
 0xf44   :  { %v1731_v9 = vpop.eup %1730  ;;  %1734 = vpow2.f32 %v1607_v11  ;;  %v1112_v58 = vadd.f32 %v2112_v37, %v205_v57 }
 0xf45   :  { %1033 = vrot.lane.b32.xlu2 %v1731_v9, %s1805_s30 }
 0xf48   :  { %v949_v10 = vpop.f32.mrf.mxu0 }
 0xf49   :  { %v1733_v59 = vpop.eup %1732 }
 0xf4a   :  { %974 = vrot.lane.b32.xlu1 %v1733_v59, %s1805_s30  ;;  %v1735_v60 = vpop.eup %1734 }
 0xf4b   :  { %v1014_v61 = vadd.f32 1.0, %v1735_v60 }
 0xf4d   :  { %1736 = vrcp.f32 %v1014_v61  ;;  %v1026_v4 = vand.u32 2147483648, %v1014_v61  ;;  %vm1020_vm13 = vweird.f32 %v1014_v61  ;;  %v1024_v5 = vand.u32 2147483647, %v1014_v61 }
 0xf4e   :  { %1738 = vpow2.f32 %v1605_v63 }
 0xf4f   :  { %v1027_v13 = vor.u32 1.1754944e-38, %v1026_v4  ;;  %vm1025_vm15 = vcmp.eq.f32.partialorder %v1024_v5, 8.507059e+37 }
 0xf53   :  { %v1737_v41 = vpop.eup %1736 }
 0xf54   :  { %v1016_v62 = vmul.f32 %v1737_v41, %v1014_v61  ;;  %vm1021_vm12 = vweird.f32 %v1737_v41  ;;  %v1739_v3 = vpop.eup %1738 }
 0xf55   :  { %vm1022_vm14 = vmor %vm1020_vm13, %vm1021_vm12  ;;  %v955_v7 = vadd.f32 1.0, %v1739_v3 }
 0xf56   :  { %v1017_v0 = vsub.f32 1.0, %v1016_v62 }
 0xf57   :  { %1740 = vrcp.f32 %v955_v7  ;;  %v967_v28 = vand.u32 2147483648, %v955_v7  ;;  %vm961_vm2 = vweird.f32 %v955_v7  ;;  %v965_v30 = vand.u32 2147483647, %v955_v7 }
 0xf58   :  { %v1018_v29 = vmul.f32 %v1737_v41, %v1017_v0 }
 0xf59   :  { %v968_v33 = vor.u32 1.1754944e-38, %v967_v28  ;;  %vm966_vm4 = vcmp.eq.f32.partialorder %v965_v30, 8.507059e+37 }
 0xf5a   :  { %v1019_v2 = vadd.f32 %v1737_v41, %v1018_v29 }
 0xf5c   :  { %v1023_v12 = vsel %vm1022_vm14, %v1737_v41, %v1019_v2 }
 0xf5d   :  { %v1028_v18 = vsel %vm1025_vm15, %v1027_v13, %v1023_v12  ;;  %v1741_v1 = vpop.eup %1740 }
 0xf5e   :  { %v957_v22 = vmul.f32 %v1741_v1, %v955_v7  ;;  %vm962_vm1 = vweird.f32 %v1741_v1  ;;  %v1031_v15 = vmul.f32 %v1028_v18, %v2099_v48 }
 0xf5f   :  { %vm963_vm3 = vmor %vm961_vm2, %vm962_vm1 }
 0xf60   :  { %v958_v23 = vsub.f32 1.0, %v957_v22 }
 0xf62   :  { %v959_v24 = vmul.f32 %v1741_v1, %v958_v23 }
 0xf64   :  { %v960_v27 = vadd.f32 %v1741_v1, %v959_v24 }
 0xf66   :  { %v964_v32 = vsel %vm963_vm3, %v1741_v1, %v960_v27 }
 0xf67   :  { %v969_v34 = vsel %vm966_vm4, %v968_v33, %v964_v32 }
 0xf68   :  { %v972_v47 = vmul.f32 %v969_v34, %v2094_v45 }
 0xf9f   :  { %v1034_v17 = vpop.permute.xlu2 %1033 }
 0xfa0   :  { %v1036_v19 = vmul.f32 %v1034_v17, %v1028_v18 }
 0xfa2   :  { %1038 = vrot.lane.b32.xlu1 %v1036_v19, %s1806_s4 }
 0xfbc   :  { %v975_v6 = vpop.permute.xlu1 %974 }
 0xfbd   :  { %v977_v35 = vmul.f32 %v975_v6, %v969_v34 }
 0xfbf   :  { %979 = vrot.lane.b32.xlu0 %v977_v35, %s1806_s4 }
0x1014   :  { %v1039_v39 = vpop.permute.xlu1 %1038 }
0x1015   :  { %v2121_v42 = vadd.f32 %v1039_v39, %v1031_v15 }
0x1017   :  { %1742 = vtanh.f32 %v2121_v42 }
0x101d   :  { %v1743_v46 = vpop.eup %1742 }
0x101e   :  { %1044 = vrot.lane.b32.xlu0 %v1743_v46, %s1805_s30 }
0x1031   :  { %v980_v31 = vpop.permute.xlu0 %979 }
0x1032   :  { %v2126_v44 = vadd.f32 %v980_v31, %v972_v47 }
0x1034   :  { %1744 = vtanh.f32 %v2126_v44 }
0x103a   :  { %v1745_v49 = vpop.eup %1744 }
0x103b   :  { %985 = vrot.lane.b32.xlu2 %v1745_v49, %s1805_s30 }
0x1090   :  { %v1045_v43 = vpop.permute.xlu0 %1044 }
0x1091   :  { %v1047_v48 = vmul.f32 %v1045_v43, %v1028_v18 }
0x1093   :  { %v1113_v50 = vpack.c.bf16 %v1047_v48, %v1047_v48  ;;  %1049 = vrot.lane.b32.xlu1 %v1047_v48, %s1806_s4 }
0x1095   :  { %v986_v40 = vpop.permute.xlu2 %985  ;;  %1115 = vrot.lane.b32.xlu0 %v1113_v50, %s1806_s4 }
0x1096   :  { %v2132_v25 = vmul.f32 %v986_v40, %v969_v34 }
0x1098   :  { %1053 = vrot.lane.b32.xlu2 %v2132_v25, %s1805_s30 }
0x10f2   :  { %v1054_v45 = vpop.permute.xlu2 %1053 }
0x1105   :  { %v1050_v52 = vpop.permute.xlu1 %1049 }
0x1106   :  { %v1056_v53 = vsel %vm85_vm0, %v1050_v52, %v1054_v45 }
0x1107   :  { %v1057_v54 = vpack.c.bf16 %v1056_v53, %v1056_v53  ;;  %v1116_v55 = vpop.permute.xlu0 %1115 }
0x1109   :  { %1608 = vmatmul.msk.bf16.vlgmr.msrb.gmra.mxu3 %vm319_vm10, %v1057_v54 }
0x1119   :  { %1610 = vmatmul.msk.bf16.vlgmr.msra.gmra.mxu3 %vm85_vm0, %v1116_v55 }
0x118c   :  { %v1070_v36 = vpop.f32.mrf.mxu3 }
0x118d   :  { %v1074_v14 = vadd.f32 %v2139_v56, %v1070_v36 }
0x118f   :  { %1746 = vtanh.f32 %v1074_v14  ;;  %v1609_v61 = vmul.f32 -1.442695, %v1074_v14 }
0x1194   :  { %v1072_v16 = vpop.f32.mrf.mxu3 }
0x1195   :  { %v1747_v8 = vpop.eup %1746 }
0x1196   :  { %1097 = vrot.lane.b32.xlu1 %v1747_v8, %s1805_s30 }
0x119c   :  { %v1129_v9 = vpop.f32.mrf.mxu3 }
0x119d   :  { %v1133_v10 = vadd.f32 %v1129_v9, %v1112_v58  ;;  %v1239_v9 = vld [vmem:[#allocation2 + $0xc8] sm:$0xff] }
0x119e   :  { %1256 = vmatpush.msrb.mxu2 %v1239_v9  ;;  %v1479_v9 = vld [vmem:[#allocation2 + $0x200] sm:$0xff] }
0x119f   :  { %1748 = vtanh.f32 %v1133_v10  ;;  %v1611_v60 = vmul.f32 -1.442695, %v1133_v10  ;;  %v1238_v10 = vld [vmem:[#allocation2 + $0xc0] sm:$0xff] }
0x11a0   :  { %1257 = vmatpush.msrb.mxu2 %v1238_v10  ;;  %v1478_v10 = vld [vmem:[#allocation2 + $0x1f8] sm:$0xff] }
0x11a1   :  { %1750 = vpow2.f32 %v1611_v60 }
0x11a2   :  { %1752 = vpow2.f32 %v1609_v61  ;;  %v1266_v61 = vld [vmem:[#allocation2 + $0xd8] sm:$0xff] }
0x11a4   :  { %v1131_v59 = vpop.f32.mrf.mxu3 }
0x11a5   :  { %v1749_v11 = vpop.eup %1748  ;;  %v1237_v59 = vld [vmem:[#allocation2 + $0xb8] sm:$0xff] }
0x11a6   :  { %1156 = vrot.lane.b32.xlu2 %v1749_v11, %s1805_s30  ;;  %1258 = vmatpush.msrb.mxu2 %v1237_v59  ;;  %v1268_v11 = vld [vmem:[#allocation2 + $0xe8] sm:$0xff]  ;;  %v1477_v59 = vld [vmem:[#allocation2 + $0x1f0] sm:$0xff] }
0x11a7   :  { %v1751_v41 = vpop.eup %1750  ;;  %1285 = vmatpush.msrb.mxu1 %v1268_v11  ;;  %v1475_v11 = vld [vmem:[#allocation2 + $0x1e0] sm:$0xff] }
0x11a8   :  { %v1137_v62 = vadd.f32 1.0, %v1751_v41  ;;  %v1753_v63 = vpop.eup %1752  ;;  %v1265_v41 = vld [vmem:[#allocation2 + $0xd0] sm:$0xff] }
0x11a9   :  { %v1078_v0 = vadd.f32 1.0, %v1753_v63 }
0x11aa   :  { %1754 = vrcp.f32 %v1137_v62  ;;  %v1149_v13 = vand.u32 2147483648, %v1137_v62  ;;  %vm1143_vm6 = vweird.f32 %v1137_v62  ;;  %v1147_v17 = vand.u32 2147483647, %v1137_v62 }
0x11ab   :  { %1756 = vrcp.f32 %v1078_v0  ;;  %v1090_v28 = vand.u32 2147483648, %v1078_v0  ;;  %vm1084_vm11 = vweird.f32 %v1078_v0  ;;  %v1088_v30 = vand.u32 2147483647, %v1078_v0 }
0x11ac   :  { %v1150_v1 = vor.u32 1.1754944e-38, %v1149_v13  ;;  %vm1148_vm8 = vcmp.eq.f32.partialorder %v1147_v17, 8.507059e+37  ;;  %v1297_v17 = vld [vmem:[#allocation2 + $0x108] sm:$0xff] }
0x11ad   :  { %v1091_v33 = vor.u32 1.1754944e-38, %v1090_v28  ;;  %vm1089_vm13 = vcmp.eq.f32.partialorder %v1088_v30, 8.507059e+37  ;;  %v1383_v28 = vld [vmem:[#allocation2 + $0x160] sm:$0xff]  ;;  %v1381_v30 = vld [vmem:[#allocation2 + $0x150] sm:$0xff] }
0x11b0   :  { %v1755_v29 = vpop.eup %1754 }
0x11b1   :  { %v1139_v2 = vmul.f32 %v1755_v29, %v1137_v62  ;;  %v1757_v3 = vpop.eup %1756  ;;  %vm1144_vm5 = vweird.f32 %v1755_v29 }
0x11b2   :  { %v1080_v5 = vmul.f32 %v1757_v3, %v1078_v0  ;;  %vm1145_vm7 = vmor %vm1143_vm6, %vm1144_vm5  ;;  %vm1085_vm9 = vweird.f32 %v1757_v3 }
0x11b3   :  { %v1140_v37 = vsub.f32 1.0, %v1139_v2  ;;  %vm1086_vm12 = vmor %vm1084_vm11, %vm1085_vm9 }
0x11b4   :  { %v1081_v12 = vsub.f32 1.0, %v1080_v5 }
0x11b5   :  { %v1141_v4 = vmul.f32 %v1755_v29, %v1140_v37 }
0x11b6   :  { %v1082_v19 = vmul.f32 %v1757_v3, %v1081_v12 }
0x11b7   :  { %v1142_v7 = vadd.f32 %v1755_v29, %v1141_v4 }
0x11b8   :  { %v1083_v27 = vadd.f32 %v1757_v3, %v1082_v19  ;;  %v1295_v19 = vld [vmem:[#allocation2 + $0xf8] sm:$0xff] }
0x11b9   :  { %v1146_v18 = vsel %vm1145_vm7, %v1755_v29, %v1142_v7 }
0x11ba   :  { %v1151_v23 = vsel %vm1148_vm8, %v1150_v1, %v1146_v18  ;;  %v1087_v32 = vsel %vm1086_vm12, %v1757_v3, %v1083_v27  ;;  %v1296_v18 = vld [vmem:[#allocation2 + $0x100] sm:$0xff]  ;;  %v1294_v1 = vld [vmem:[#allocation2 + $0xf0] sm:$0xff]  ;;  %v1384_v27 = vld [vmem:[#allocation2 + $0x168] sm:$0xff] }
0x11bb   :  { %v1092_v34 = vsel %vm1089_vm13, %v1091_v33, %v1087_v32  ;;  %v1154_v15 = vmul.f32 %v1151_v23, %v2121_v42 }
0x11bc   :  { %v1095_v47 = vmul.f32 %v1092_v34, %v2126_v44 }
0x1200   :  { %v1157_v22 = vpop.permute.xlu2 %1156 }
0x1201   :  { %v1159_v24 = vmul.f32 %v1157_v22, %v1151_v23  ;;  %v1413_v22 = vld [vmem:[#allocation2 + $0x188] sm:$0xff] }
0x1203   :  { %1161 = vrot.lane.b32.xlu1 %v1159_v24, %s1806_s4  ;;  %v1410_v24 = vld [vmem:[#allocation2 + $0x170] sm:$0xff] }
0x1208   :  { %v1098_v6 = vpop.permute.xlu1 %1097 }
0x1209   :  { %v1100_v35 = vmul.f32 %v1098_v6, %v1092_v34 }
0x120b   :  { %1102 = vrot.lane.b32.xlu0 %v1100_v35, %s1806_s4 }
0x1275   :  { %v1162_v39 = vpop.permute.xlu1 %1161 }
0x1276   :  { %v1164_v46 = vadd.f32 %v1162_v39, %v1154_v15 }
0x1278   :  { %1758 = vtanh.f32 %v1164_v46  ;;  %v1326_v46 = vld [vmem:[#allocation2 + $0x128] sm:$0xff] }
0x1279   :  { %1343 = vmatpush.msrb.mxu3 %v1326_v46  ;;  %v1510_v46 = vld [vmem:[#allocation2 + $0x250] sm:$0xff] }
0x127d   :  { %v1103_v31 = vpop.permute.xlu0 %1102 }
0x127e   :  { %v1759_v49 = vpop.eup %1758  ;;  %v2149_v43 = vadd.f32 %v1103_v31, %v1095_v47  ;;  %v1325_v47 = vld [vmem:[#allocation2 + $0x120] sm:$0xff]  ;;  %v1324_v31 = vld [vmem:[#allocation2 + $0x118] sm:$0xff] }
0x127f   :  { %1167 = vrot.lane.b32.xlu0 %v1759_v49, %s1805_s30  ;;  %1344 = vmatpush.msrb.mxu3 %v1325_v47  ;;  %v1323_v49 = vld [vmem:[#allocation2 + $0x110] sm:$0xff]  ;;  %v1509_v47 = vld [vmem:[#allocation2 + $0x248] sm:$0xff] }
0x1280   :  { %1760 = vtanh.f32 %v2149_v43 }
0x1281   :  { %1345 = vmatpush.msrb.mxu3 %v1324_v31  ;;  %v1508_v31 = vld [vmem:[#allocation2 + $0x240] sm:$0xff] }
0x1283   :  { %1346 = vmatpush.msrb.mxu3 %v1323_v49  ;;  %v1486_v49 = vld [vmem:[#allocation2 + $0x238] sm:$0xff] }
0x1286   :  { %v1761_v48 = vpop.eup %1760 }
0x1287   :  { %1108 = vrot.lane.b32.xlu2 %v1761_v48, %s1805_s30  ;;  %v1354_v48 = vld [vmem:[#allocation2 + $0x140] sm:$0xff] }
0x12e1   :  { %v1109_v50 = vpop.permute.xlu2 %1108 }
0x12e2   :  { %v1111_v40 = vmul.f32 %v1109_v50, %v1092_v34  ;;  %v1353_v50 = vld [vmem:[#allocation2 + $0x138] sm:$0xff] }
0x12e4   :  { %1176 = vrot.lane.b32.xlu2 %v1111_v40, %s1805_s30 }
0x12f1   :  { %v1168_v42 = vpop.permute.xlu0 %1167 }
0x12f2   :  { %v1170_v45 = vmul.f32 %v1168_v42, %v1151_v23  ;;  %v1412_v23 = vld [vmem:[#allocation2 + $0x180] sm:$0xff] }
0x12f4   :  { %1172 = vrot.lane.b32.xlu1 %v1170_v45, %s1806_s4 }
0x133e   :  { %v1177_v44 = vpop.permute.xlu2 %1176 }
0x1366   :  { %v1173_v52 = vpop.permute.xlu1 %1172 }
0x1367   :  { %v1179_v53 = vsel %vm85_vm0, %v1173_v52, %v1177_v44  ;;  %v1442_v44 = vld [vmem:[#allocation2 + $0x1a8] sm:$0xff]  ;;  %v1441_v52 = vld [vmem:[#allocation2 + $0x1a0] sm:$0xff] }
0x1368   :  { %v1180_v54 = vpack.c.bf16 %v1179_v53, %v1179_v53  ;;  %1460 = vmatpush.msra.mxu3 %v1442_v44  ;;  %v1440_v53 = vld [vmem:[#allocation2 + $0x198] sm:$0xff] }
0x136a   :  { %1612 = vmatmul.msk.bf16.vlgmr.msrb.gmra.mxu0 %vm319_vm10, %v1180_v54  ;;  %1461 = vmatpush.msra.mxu3 %v1441_v52  ;;  %v1439_v54 = vld [vmem:[#allocation2 + $0x190] sm:$0xff] }
0x136c   :  { %1462 = vmatpush.msra.mxu3 %v1440_v53 }
0x136e   :  { %1463 = vmatpush.msra.mxu3 %v1439_v54 }
0x13e7   :  { %v1193_v55 = vpop.f32.mrf.mxu0 }
0x13e8   :  { %v1197_v36 = vadd.f32 %v2139_v56, %v1193_v55  ;;  %v1236_v56 = vld [vmem:[#allocation2 + $0xb0] sm:$0xff] }
0x13e9   :  { %1259 = vmatpush.msrb.mxu2 %v1236_v56  ;;  %v1485_v55 = vld [vmem:[#allocation2 + $0x230] sm:$0xff]  ;;  %v1476_v56 = vld [vmem:[#allocation2 + $0x1e8] sm:$0xff] }
0x13ea   :  { %1762 = vtanh.f32 %v1197_v36  ;;  %v1613_v8 = vmul.f32 -1.442695, %v1197_v36  ;;  %v1484_v36 = vld [vmem:[#allocation2 + $0x228] sm:$0xff] }
0x13eb   :  { %1314 = vmatpush.msra.mxu2 %v1297_v17  ;;  %v1517_v17 = vld [vmem:[#allocation2 + $0x288] sm:$0xff] }
0x13ec   :  { %1764 = vpow2.f32 %v1613_v8  ;;  %v1482_v8 = vld [vmem:[#allocation2 + $0x218] sm:$0xff] }
0x13ed   :  { %1315 = vmatpush.msra.mxu2 %v1296_v18 }
0x13ef   :  { %v1195_v14 = vpop.f32.mrf.mxu0  ;;  %1316 = vmatpush.msra.mxu2 %v1295_v19 }
0x13f0   :  { %v1763_v16 = vpop.eup %1762  ;;  %v1483_v14 = vld [vmem:[#allocation2 + $0x220] sm:$0xff] }
0x13f1   :  { %1220 = vrot.lane.b32.xlu0 %v1763_v16, %s1805_s30  ;;  %1317 = vmatpush.msra.mxu2 %v1294_v1  ;;  %v1516_v1 = vld [vmem:[#allocation2 + $0x280] sm:$0xff] }
0x13f2   :  { %v1765_v57 = vpop.eup %1764 }
0x13f3   :  { %v1201_v58 = vadd.f32 1.0, %v1765_v57  ;;  %v1481_v57 = vld [vmem:[#allocation2 + $0x210] sm:$0xff] }
0x13f5   :  { %1766 = vrcp.f32 %v1201_v58  ;;  %v1213_v29 = vand.u32 2147483648, %v1201_v58  ;;  %vm1207_vm14 = vweird.f32 %v1201_v58  ;;  %v1211_v2 = vand.u32 2147483647, %v1201_v58 }
0x13f7   :  { %v1214_v3 = vor.u32 1.1754944e-38, %v1213_v29  ;;  %vm1212_vm1 = vcmp.eq.f32.partialorder %v1211_v2, 8.507059e+37  ;;  %v1521_v29 = vld [vmem:[#allocation2 + $0x2a8] sm:$0xff]  ;;  %v1235_v2 = vld [vmem:[#allocation2 + $0x1b0] sm:$0xff] }
0x13f9   :  { %1240 = vrot.lane.b32.xlu0 %v1957_v20, %s1806_s4  ;;  %v1267_v20 = vld [vmem:[#allocation2 + $0xe0] sm:$0xff] }
0x13fa   :  { %1286 = vmatpush.msrb.mxu1 %v1267_v20  ;;  %v1473_v20 = vld [vmem:[#allocation2 + $0x1d0] sm:$0xff] }
0x13fb   :  { %v1767_v60 = vpop.eup %1766 }
0x13fc   :  { %1287 = vmatpush.msrb.mxu1 %v1266_v61  ;;  %vm1208_vm10 = vweird.f32 %v1767_v60  ;;  %v1472_v61 = vld [vmem:[#allocation2 + $0x1c8] sm:$0xff] }
0x13fd   :  { %vm1209_vm15 = vmor %vm1207_vm14, %vm1208_vm10 }
0x13fe   :  { %1288 = vmatpush.msrb.mxu1 %v1265_v41  ;;  %v1470_v41 = vld [vmem:[#allocation2 + $0x1b8] sm:$0xff] }
0x1400   :  { %1401 = vmatpush.msra.mxu1 %v1384_v27 }
0x1401   :  { %1269 = vrot.lane.b32.xlu0 %v2001_v38, %s1806_s4  ;;  %v1203_v38 = vmul.f32 %v1767_v60, %v1201_v58  ;;  %v1480_v58 = vld [vmem:[#allocation2 + $0x208] sm:$0xff] }
0x1402   :  { %1402 = vmatpush.msra.mxu1 %v1383_v28  ;;  %v1513_v28 = vld [vmem:[#allocation2 + $0x268] sm:$0xff] }
0x1403   :  { %v1204_v62 = vsub.f32 1.0, %v1203_v38  ;;  %v1471_v38 = vld [vmem:[#allocation2 + $0x1c0] sm:$0xff] }
0x1405   :  { %v1205_v63 = vmul.f32 %v1767_v60, %v1204_v62  ;;  %v1523_v62 = vld [vmem:[#allocation2 + $0x2b8] sm:$0xff] }
0x1407   :  { %v1206_v0 = vadd.f32 %v1767_v60, %v1205_v63  ;;  %v1522_v63 = vld [vmem:[#allocation2 + $0x2b0] sm:$0xff] }
0x1409   :  { %v1210_v37 = vsel %vm1209_vm15, %v1767_v60, %v1206_v0  ;;  %v1474_v60 = vld [vmem:[#allocation2 + $0x1d8] sm:$0xff] }
0x140a   :  { %v2164_v5 = vsel %vm1212_vm1, %v1214_v3, %v1210_v37  ;;  %v1520_v37 = vld [vmem:[#allocation2 + $0x2a0] sm:$0xff] }
0x140b   :  { %v1218_v32 = vmul.f32 %v2164_v5, %v2149_v43  ;;  %v1355_v43 = vld [vmem:[#allocation2 + $0x148] sm:$0xff] }
0x140c   :  { %1372 = vmatpush.msra.mxu0 %v1355_v43 }
0x140e   :  { %1373 = vmatpush.msra.mxu0 %v1354_v48 }
0x1410   :  { %1374 = vmatpush.msra.mxu0 %v1353_v50 }
0x1463   :  { %v1221_v4 = vpop.permute.xlu0 %1220 }
0x1464   :  { %v1223_v7 = vmul.f32 %v1221_v4, %v2164_v5  ;;  %v1519_v4 = vld [vmem:[#allocation2 + $0x298] sm:$0xff] }
0x1466   :  { %1225 = vrot.lane.b32.xlu1 %v1223_v7, %s1806_s4  ;;  %v1518_v7 = vld [vmem:[#allocation2 + $0x290] sm:$0xff] }
0x146b   :  { %v1241_v12 = vpop.permute.xlu0 %1240 }
0x146c   :  { %1614 = vmatmul.msk.f32.vlgmr.msrb.gmra.mxu2 %vm85_vm0, %v1241_v12 }
0x146d   :  { %1430 = vmatpush.msrb.mxu2 %v1413_v22 }
0x146e   :  { %1298 = vrot.lane.b32.xlu1 %v2039_v51, %s1806_s4  ;;  %v1411_v51 = vld [vmem:[#allocation2 + $0x178] sm:$0xff] }
0x146f   :  { %1431 = vmatpush.msrb.mxu2 %v1412_v23  ;;  %v1515_v23 = vld [vmem:[#allocation2 + $0x278] sm:$0xff] }
0x1471   :  { %1432 = vmatpush.msrb.mxu2 %v1411_v51 }
0x1473   :  { %v1270_v13 = vpop.permute.xlu0 %1269  ;;  %1433 = vmatpush.msrb.mxu2 %v1410_v24  ;;  %v1514_v24 = vld [vmem:[#allocation2 + $0x270] sm:$0xff] }
0x1474   :  { %1615 = vmatmul.msk.f32.vlgmr.msrb.gmra.mxu1 %vm85_vm0, %v1270_v13 }
0x1476   :  { %1414 = vrot.lane.b32.xlu1 %v1111_v40, %s1806_s4 }
0x147e   :  { %1385 = vrot.lane.b32.xlu1 %v2132_v25, %s1806_s4  ;;  %v1382_v25 = vld [vmem:[#allocation2 + $0x158] sm:$0xff] }
0x147f   :  { %1403 = vmatpush.msra.mxu1 %v1382_v25  ;;  %v1512_v25 = vld [vmem:[#allocation2 + $0x260] sm:$0xff] }
0x1481   :  { %1404 = vmatpush.msra.mxu1 %v1381_v30 }
0x1483   :  { %1525 = vmatpush.msrb.mxu1 %v1523_v62 }
0x1485   :  { %1526 = vmatpush.msrb.mxu1 %v1522_v63 }
0x1487   :  { %1527 = vmatpush.msrb.mxu1 %v1521_v29 }
0x1489   :  { %1528 = vmatpush.msrb.mxu1 %v1520_v37 }
0x148b   :  { %1529 = vmatpush.msrb.mxu1 %v1519_v4 }
0x148d   :  { %1530 = vmatpush.msrb.mxu1 %v1518_v7 }
0x148f   :  { %1531 = vmatpush.msrb.mxu1 %v1517_v17 }
0x1491   :  { %1532 = vmatpush.msrb.mxu1 %v1516_v1 }
0x1493   :  { %1533 = vmatpush.msrb.mxu1 %v1515_v23 }
0x1495   :  { %1534 = vmatpush.msrb.mxu1 %v1514_v24 }
0x1497   :  { %1535 = vmatpush.msrb.mxu1 %v1513_v28 }
0x1499   :  { %1536 = vmatpush.msrb.mxu1 %v1512_v25 }
0x14d8   :  { %v1226_v33 = vpop.permute.xlu1 %1225 }
0x14d9   :  { %v1228_v6 = vadd.f32 %v1226_v33, %v1218_v32  ;;  %v1511_v33 = vld [vmem:[#allocation2 + $0x258] sm:$0xff] }
0x14da   :  { %1537 = vmatpush.msrb.mxu1 %v1511_v33 }
0x14db   :  { %1768 = vtanh.f32 %v1228_v6 }
0x14dc   :  { %1538 = vmatpush.msrb.mxu1 %v1510_v46 }
0x14de   :  { %1539 = vmatpush.msrb.mxu1 %v1509_v47 }
0x14e0   :  { %v1299_v34 = vpop.permute.xlu1 %1298  ;;  %1540 = vmatpush.msrb.mxu1 %v1508_v31 }
0x14e1   :  { %v1769_v35 = vpop.eup %1768  ;;  %1616 = vmatmul.msk.f32.vlgmr.msra.gmra.mxu2 %vm85_vm0, %v1299_v34 }
0x14e2   :  { %1231 = vrot.lane.b32.xlu2 %v1769_v35, %s1805_s30 }
0x14e8   :  { %v1415_v15 = vpop.permute.xlu1 %1414 }
0x14e9   :  { %1620 = vmatmul.msk.f32.vlgmr.msrb.gmra.mxu2 %vm85_vm0, %v1415_v15 }
0x14ea   :  { %1327 = vrot.lane.b32.xlu2 %v2074_v21, %s1806_s4  ;;  %v1352_v21 = vld [vmem:[#allocation2 + $0x130] sm:$0xff] }
0x14eb   :  { %1375 = vmatpush.msra.mxu0 %v1352_v21  ;;  %v1524_v21 = vld [vmem:[#allocation2 + $0x2c0] sm:$0xff] }
0x14ed   :  { %1487 = vmatpush.msrb.mxu0 %v1485_v55 }
0x14ef   :  { %1488 = vmatpush.msrb.mxu0 %v1484_v36  ;;  %v1261_v0 = vpop.f32.mrf.mxu2 }
0x14f0   :  { %v1386_v39 = vpop.permute.xlu1 %1385  ;;  %v1264_v3 = vadd.f32 %v1261_v0, %v1235_v2 }
0x14f1   :  { %1619 = vmatmul.msk.f32.vlgmr.msra.gmra.mxu1 %vm85_vm0, %v1386_v39  ;;  %1489 = vmatpush.msrb.mxu0 %v1483_v14 }
0x14f2   :  { %1356 = vrot.lane.b32.xlu2 %v2105_v26, %s1806_s4 }
0x14f3   :  { %1490 = vmatpush.msrb.mxu0 %v1482_v8 }
0x14f5   :  { %1491 = vmatpush.msrb.mxu0 %v1481_v57 }
0x14f7   :  { %1492 = vmatpush.msrb.mxu0 %v1480_v58 }
0x14f9   :  { %1493 = vmatpush.msrb.mxu0 %v1479_v9 }
0x14fb   :  { %1494 = vmatpush.msrb.mxu0 %v1478_v10 }
0x14fd   :  { %1495 = vmatpush.msrb.mxu0 %v1477_v59 }
0x14ff   :  { %1496 = vmatpush.msrb.mxu0 %v1476_v56 }
0x1501   :  { %1497 = vmatpush.msrb.mxu0 %v1475_v11 }
0x1503   :  { %1498 = vmatpush.msrb.mxu0 %v1474_v60 }
0x1505   :  { %1499 = vmatpush.msrb.mxu0 %v1473_v20 }
0x1507   :  { %1500 = vmatpush.msrb.mxu0 %v1472_v61 }
0x1509   :  { %1501 = vmatpush.msrb.mxu0 %v1471_v38 }
0x150b   :  { %1502 = vmatpush.msrb.mxu0 %v1470_v41 }
0x153c   :  { %v1232_v40 = vpop.permute.xlu2 %1231 }
0x153d   :  { %v1234_v42 = vmul.f32 %v1232_v40, %v2164_v5  ;;  %v1290_v5 = vpop.f32.mrf.mxu1 }
0x153e   :  { %v1293_v13 = vadd.f32 %v1290_v5, %v1264_v3 }
0x153f   :  { %1444 = vrot.lane.b32.xlu0 %v1234_v42, %s1806_s4 }
0x1544   :  { %v1328_v26 = vpop.permute.xlu2 %1327 }
0x1545   :  { %1617 = vmatmul.msk.f32.vlgmr.msrb.gmra.mxu3 %vm85_vm0, %v1328_v26 }
0x154c   :  { %v1357_v45 = vpop.permute.xlu2 %1356 }
0x154d   :  { %1618 = vmatmul.msk.f32.vlgmr.msra.gmra.mxu0 %vm85_vm0, %v1357_v45 }
0x1564   :  { %v1319_v12 = vpop.f32.mrf.mxu2 }
0x1565   :  { %v1322_v19 = vadd.f32 %v1319_v12, %v1293_v13 }
0x156c   :  { %v1435_v6 = vpop.f32.mrf.mxu2 }
0x156e   :  { %v1406_v30 = vpop.f32.mrf.mxu1 }
0x15b1   :  { %v1445_v16 = vpop.permute.xlu0 %1444 }
0x15b2   :  { %1621 = vmatmul.msk.f32.vlgmr.msra.gmra.mxu3 %vm85_vm0, %v1445_v16 }
0x15c8   :  { %v1348_v18 = vpop.f32.mrf.mxu3 }
0x15c9   :  { %v1351_v22 = vadd.f32 %v1348_v18, %v1322_v19 }
0x15ca   :  { %v1377_v51 = vpop.f32.mrf.mxu0 }
0x15cb   :  { %v1380_v27 = vadd.f32 %v1377_v51, %v1351_v22 }
0x15cd   :  { %v1409_v32 = vadd.f32 %v1406_v30, %v1380_v27 }
0x15cf   :  { %v1438_v34 = vadd.f32 %v1435_v6, %v1409_v32 }
0x1635   :  { %v1465_v35 = vpop.f32.mrf.mxu3 }
0x1636   :  { %v1468_v15 = vadd.f32 %v1465_v35, %v1438_v34 }
0x1638   :  { %v1469_v39 = vmax.f32 %v1468_v15, 0.0 }
0x163a   :  { %1503 = vmatmul.f32.vlgmr.msrb.gmra.mxu0 %v1469_v39 }
0x16b7   :  { %v1504_v43 = vpop.f32.mrf.mxu0 }
0x16b8   :  { %v1505_v48 = vadd.f32 %v1504_v43, %v1486_v49 }
0x16ba   :  { %v1507_v50 = vmax.f32 %v1505_v48, 0.0 }
0x16bc   :  { %1541 = vmatmul.f32.vlgmr.msrb.gmra.mxu1 %v1507_v50 }
0x1739   :  { %v1542_v40 = vpop.f32.mrf.mxu1 }
0x173a   :  { %v1543_v42 = vadd.f32 %v1542_v40, %v1524_v21 }
0x173c   :  { %1545 = vst [vmem:[%s2196_s3] sm:$0xff] %v1543_v42 }
0x173d   :  { %1550 = vsyncpa [#allocation3], 1 }

</bundles_post_ra>
